<compile_context>
chip_gen: v6e
topology: v6e:2x2x1
jax: 0.10.0
libtpu: 0.0.40
codegen_flags: <defaults>
</compile_context>

<pallas_src>
import functools
import math

import numpy as np
import jax
import jax.numpy as jnp
from jax.experimental import pallas as pl
from jax.experimental.pallas import tpu as pltpu


# -----------------------------------------------------------------------------
# The single fused kernel
# -----------------------------------------------------------------------------
def _encoder_kernel(x_ref, eps_ref,
                    s1_ref, m1_ref, t1_ref,
                    s2_ref, m2_ref, t2_ref,
                    s3_ref, m3_ref, t3_ref,
                    sl_ref, ml_ref, tl_ref,
                    w2_ref, b2_ref, w3_ref, b3_ref,
                    out_ref, *, nz):
    """conv1..conv3 (+BN/bias/ReLU), flatten, linear1..3, exp, sample, KL."""

    def block(x_bf16, s_ref, m_ref, t_ref):
        # y = relu( sum_dy (S_dy @ x) @ M_dy + shift ), all matmuls bf16 -> f32.
        rows_out = s_ref.shape[1]
        cols_out = m_ref.shape[2]
        acc = jnp.zeros((rows_out, cols_out), jnp.float32)
        for dy in range(s_ref.shape[0]):            # statically unrolled (3 taps)
            sel = jnp.dot(s_ref[dy], x_bf16,
                          preferred_element_type=jnp.float32)
            acc = acc + jnp.dot(sel.astype(jnp.bfloat16), m_ref[dy],
                                preferred_element_type=jnp.float32)
        y = jnp.maximum(acc + t_ref[...], 0.0)      # shift = folded BN/bias; ReLU
        return y.astype(jnp.bfloat16)

    x0 = x_ref[...]                                 # (B*28, 28*nc)   bf16
    x1 = block(x0, s1_ref, m1_ref, t1_ref)          # (B*14, 14*ngf)
    x2 = block(x1, s2_ref, m2_ref, t2_ref)          # (B*7,  7*2ngf)
    x3 = block(x2, s3_ref, m3_ref, t3_ref)          # (B*3,  3*4ngf)
    h  = block(x3, sl_ref, ml_ref, tl_ref)          # (B, 16*ngf) = relu(linear1)

    mu = jnp.dot(h, w2_ref[...], preferred_element_type=jnp.float32) + b2_ref[...]
    log_sigma = (jnp.dot(h, w3_ref[...], preferred_element_type=jnp.float32)
                 + b3_ref[...])
    sigma = jnp.exp(log_sigma)
    z = mu + sigma * eps_ref[...]                                   # (B, nz) f32
    kl = jnp.sum((sigma * sigma + mu * mu - log_sigma - 1.0) * 0.5,
                 keepdims=True)                                     # (1, 1)

    b = z.shape[0]
    out_ref[...] = jnp.zeros_like(out_ref)          # one unmasked lane-dense store
    out_ref[:, 0:nz] = z                            # z in columns [0, nz)
    out_ref[:, nz:nz + 1] = jnp.broadcast_to(kl, (b, 1))   # KL in column nz


# -----------------------------------------------------------------------------
# Forward wrapper: the only XLA-level glue is the NCHW -> (B*H, W*C) reshape.
# -----------------------------------------------------------------------------
def mnist_encoder_forward(params, x_nchw, eps):
    B, nc, H, W = x_nchw.shape
    nz = eps.shape[1]
    slab_cols = ((nz + 1 + 127) // 128) * 128       # lane-dense output width

    x2d = jnp.transpose(x_nchw, (0, 2, 3, 1)).reshape(B * H, W * nc)
    x2d = x2d.astype(jnp.bfloat16)

    args = (x2d, eps,
            params["s1"], params["m1"], params["t1"],
            params["s2"], params["m2"], params["t2"],
            params["s3"], params["m3"], params["t3"],
            params["sl"], params["ml"], params["tl"],
            params["w2"], params["b2"], params["w3"], params["b3"])

    vmem = pl.BlockSpec(memory_space=pltpu.MemorySpace.VMEM)
    out = pl.pallas_call(
        functools.partial(_encoder_kernel, nz=nz),
        out_shape=jax.ShapeDtypeStruct((B, slab_cols), jnp.float32),
        in_specs=[vmem] * len(args),
        out_specs=vmem,
    )(*args)

    z = out[:, :nz]
    kl = out[0, nz]
    return z, kl


# -----------------------------------------------------------------------------
# Host-side construction of the selection (S) / block-weight (M) matrices.
# -----------------------------------------------------------------------------
def _conv_out(n, stride, pad):
    return (n + 2 * pad - 3) // stride + 1


def _build_conv(Wt, shift_c, scale_c, B, Hin, Win, Cin, stride, pad):
    """Build (S, M, T) for one 3x3 conv acting on (B*Hin, Win*Cin) activations.

    S[dy, b*Ho+i, b*Hin+r] = 1    iff r = i*stride + dy - pad is in range
    M[dy, w*Cin+ci, j*Cout+co]    = Wt[co, ci, dy, dx] * scale[co]  (w = j*s+dx-pad)
    T[0, j*Cout+co]               = shift[co]          (bias/BN shift, f32)
    """
    Cout = Wt.shape[0]
    Ho, Wo = _conv_out(Hin, stride, pad), _conv_out(Win, stride, pad)
    S = np.zeros((3, B * Ho, B * Hin), np.float32)
    M = np.zeros((3, Win * Cin, Wo * Cout), np.float32)
    for dy in range(3):
        for b in range(B):
            for i in range(Ho):
                r = i * stride + dy - pad
                if 0 <= r < Hin:
                    S[dy, b * Ho + i, b * Hin + r] = 1.0
        for j in range(Wo):
            for dx in range(3):
                w = j * stride + dx - pad
                if 0 <= w < Win:
                    M[dy, w * Cin:(w + 1) * Cin, j * Cout:(j + 1) * Cout] += (
                        Wt[:, :, dy, dx].T * scale_c[None, :])
    T = np.tile(shift_c, Wo).reshape(1, Wo * Cout)
    mats = (jnp.asarray(S, jnp.bfloat16), jnp.asarray(M, jnp.bfloat16),
            jnp.asarray(T, jnp.float32))
    return mats, (Ho, Wo, Cout)


def _build_linear1(W1, b1, B, H, W, C):
    """linear1 on the torch NCHW-flattened conv3 output, as S/M/T matrices."""
    hidden = W1.shape[0]
    W1r = W1.reshape(hidden, C, H, W)               # torch flatten order (c, h, w)
    S = np.zeros((H, B, B * H), np.float32)
    M = np.zeros((H, W * C, hidden), np.float32)
    for h in range(H):
        for b in range(B):
            S[h, b, b * H + h] = 1.0
        for w in range(W):
            M[h, w * C:(w + 1) * C, :] = W1r[:, :, h, w].T
    T = b1.reshape(1, hidden)
    return (jnp.asarray(S, jnp.bfloat16), jnp.asarray(M, jnp.bfloat16),
            jnp.asarray(T, jnp.float32))


# -----------------------------------------------------------------------------
# Parameter setup (deterministic synthetic init, PyTorch layouts, eval-mode BN)
# -----------------------------------------------------------------------------
class KeyGen:
    def __init__(self, seed):
        self.key = jax.random.PRNGKey(seed)

    def __call__(self):
        self.key, k = jax.random.split(self.key)
        return k


def init_params(seed, B, input_nc, ngf, nz, isize):
    kg = KeyGen(seed)

    def nrm(shape, std):
        return np.asarray(std * jax.random.normal(kg(), shape, jnp.float32))

    def conv_init(cin, cout):
        return (nrm((cout, cin, 3, 3), 1.0 / (3.0 * math.sqrt(cin))),
                nrm((cout,), 0.05))

    def bn_init(c):
        gamma = 1.0 + nrm((c,), 0.1)
        beta = nrm((c,), 0.05)
        mean = nrm((c,), 0.05)
        var = 1.0 + np.abs(nrm((c,), 0.1))
        return gamma, beta, mean, var

    def bn_fold(gamma, beta, mean, var, bias, eps=1e-5):
        # eval-mode BN(conv + bias) = scale*conv + (scale*(bias - mean) + beta)
        scale = gamma / np.sqrt(var + eps)
        shift = beta + (bias - mean) * scale
        return scale, shift

    p = {}
    H = Wd = isize
    # conv1 + batch1 (folded, eval semantics)
    Wc1, bc1 = conv_init(input_nc, ngf)
    sc, sh = bn_fold(*bn_init(ngf), bias=bc1)
    (p["s1"], p["m1"], p["t1"]), (H, Wd, C) = _build_conv(
        Wc1, sh, sc, B, H, Wd, input_nc, stride=2, pad=1)
    # conv2 + batch2
    Wc2, bc2 = conv_init(ngf, ngf * 2)
    sc, sh = bn_fold(*bn_init(ngf * 2), bias=bc2)
    (p["s2"], p["m2"], p["t2"]), (H, Wd, C) = _build_conv(
        Wc2, sh, sc, B, H, Wd, ngf, stride=2, pad=1)
    # conv3 (bias only, no BN)
    Wc3, bc3 = conv_init(ngf * 2, ngf * 4)
    (p["s3"], p["m3"], p["t3"]), (H, Wd, C) = _build_conv(
        Wc3, bc3, np.ones(ngf * 4, np.float32), B, H, Wd, ngf * 2,
        stride=2, pad=0)
    # linear1 (torch NCHW flatten order folded into M)
    hidden = ngf * 16
    fin = C * H * Wd
    Wl1 = nrm((hidden, fin), 1.0 / math.sqrt(fin))
    bl1 = nrm((hidden,), 0.05)
    p["sl"], p["ml"], p["tl"] = _build_linear1(Wl1, bl1, B, H, Wd, C)
    # linear2 / linear3
    for name in ("2", "3"):
        Wl = nrm((nz, hidden), 1.0 / math.sqrt(hidden))   # PyTorch (out, in)
        bl = nrm((nz,), 0.05)
        p["w" + name] = jnp.asarray(Wl.T, jnp.bfloat16)   # (hidden, nz)
        p["b" + name] = jnp.asarray(bl.reshape(1, nz), jnp.float32)
    return p


# -----------------------------------------------------------------------------
if __name__ == "__main__":
    # 28x28 input is required by the module geometry (linear1 expects 3*3*(4*ngf)).
    B, input_nc, ngf, nz, isize = 4, 1, 16, 8, 28

    params = init_params(0, B, input_nc, ngf, nz, isize)

    kx, keps = jax.random.split(jax.random.PRNGKey(0))
    x = jax.random.normal(kx, (B, input_nc, isize, isize), jnp.float32)
    eps = jax.random.normal(keps, (B, nz), jnp.float32)   # N(0,1) sample (reparam)

    fwd = jax.jit(mnist_encoder_forward)
    z, kl = fwd(params, x, eps)
    z = jax.block_until_ready(z)

    assert z.shape == (B, nz), z.shape
    assert bool(jnp.all(jnp.isfinite(z)))
    assert bool(jnp.isfinite(kl))
    print("KERNEL_OK")
</pallas_src>

<mosaic_0001>
module attributes {stable_mosaic.version = 11 : i64} {
  func.func @_encoder_kernel(%arg0: memref<112x28xbf16, #tpu.memory_space<vmem>>, %arg1: memref<4x8xf32, #tpu.memory_space<vmem>>, %arg2: memref<3x56x112xbf16, #tpu.memory_space<vmem>>, %arg3: memref<3x28x224xbf16, #tpu.memory_space<vmem>>, %arg4: memref<1x224xf32, #tpu.memory_space<vmem>>, %arg5: memref<3x28x56xbf16, #tpu.memory_space<vmem>>, %arg6: memref<3x224x224xbf16, #tpu.memory_space<vmem>>, %arg7: memref<1x224xf32, #tpu.memory_space<vmem>>, %arg8: memref<3x12x28xbf16, #tpu.memory_space<vmem>>, %arg9: memref<3x224x192xbf16, #tpu.memory_space<vmem>>, %arg10: memref<1x192xf32, #tpu.memory_space<vmem>>, %arg11: memref<3x4x12xbf16, #tpu.memory_space<vmem>>, %arg12: memref<3x192x256xbf16, #tpu.memory_space<vmem>>, %arg13: memref<1x256xf32, #tpu.memory_space<vmem>>, %arg14: memref<256x8xbf16, #tpu.memory_space<vmem>>, %arg15: memref<1x8xf32, #tpu.memory_space<vmem>>, %arg16: memref<256x8xbf16, #tpu.memory_space<vmem>>, %arg17: memref<1x8xf32, #tpu.memory_space<vmem>>, %arg18: memref<4x128xf32, #tpu.memory_space<vmem>>) attributes {dimension_semantics = [], scalar_prefetch = 0 : i64, scratch_operands = 0 : i64, tpu.core_type = #tpu.core_type<tc>} {
    %c0 = arith.constant 0 : index
    %c0_0 = arith.constant 0 : index
    %0 = vector.load %arg0[%c0, %c0_0] : memref<112x28xbf16, #tpu.memory_space<vmem>>, vector<112x28xbf16>
    %cst = arith.constant 0.000000e+00 : f32
    %1 = vector.broadcast %cst : f32 to vector<56x224xf32>
    %c0_1 = arith.constant 0 : index
    %c0_2 = arith.constant 0 : index
    %c0_3 = arith.constant 0 : index
    %2 = vector.load %arg2[%c0_1, %c0_2, %c0_3] : memref<3x56x112xbf16, #tpu.memory_space<vmem>>, vector<1x56x112xbf16>
    %3 = vector.shape_cast %2 : vector<1x56x112xbf16> to vector<56x112xbf16>
    %cst_4 = arith.constant dense<0.000000e+00> : vector<56x28xf32>
    %4 = tpu.matmul %3, %0, %cst_4 {dimension_numbers = #tpu.dot_dimension_numbers<[1], [0], [0], [1], [0, 0, 1, 1], [], []>} : vector<56x112xbf16>, vector<112x28xbf16>, vector<56x28xf32> -> vector<56x28xf32>
    %5 = arith.truncf %4 : vector<56x28xf32> to vector<56x28xbf16>
    %c0_5 = arith.constant 0 : index
    %c0_6 = arith.constant 0 : index
    %c0_7 = arith.constant 0 : index
    %6 = vector.load %arg3[%c0_5, %c0_6, %c0_7] : memref<3x28x224xbf16, #tpu.memory_space<vmem>>, vector<1x28x224xbf16>
    %7 = vector.shape_cast %6 : vector<1x28x224xbf16> to vector<28x224xbf16>
    %cst_8 = arith.constant dense<0.000000e+00> : vector<56x224xf32>
    %8 = tpu.matmul %5, %7, %cst_8 {dimension_numbers = #tpu.dot_dimension_numbers<[1], [0], [0], [1], [0, 0, 1, 1], [], []>} : vector<56x28xbf16>, vector<28x224xbf16>, vector<56x224xf32> -> vector<56x224xf32>
    %9 = arith.addf %1, %8 : vector<56x224xf32>
    %c1 = arith.constant 1 : index
    %c0_9 = arith.constant 0 : index
    %c0_10 = arith.constant 0 : index
    %10 = vector.load %arg2[%c1, %c0_9, %c0_10] : memref<3x56x112xbf16, #tpu.memory_space<vmem>>, vector<1x56x112xbf16>
    %11 = vector.shape_cast %10 : vector<1x56x112xbf16> to vector<56x112xbf16>
    %cst_11 = arith.constant dense<0.000000e+00> : vector<56x28xf32>
    %12 = tpu.matmul %11, %0, %cst_11 {dimension_numbers = #tpu.dot_dimension_numbers<[1], [0], [0], [1], [0, 0, 1, 1], [], []>} : vector<56x112xbf16>, vector<112x28xbf16>, vector<56x28xf32> -> vector<56x28xf32>
    %13 = arith.truncf %12 : vector<56x28xf32> to vector<56x28xbf16>
    %c1_12 = arith.constant 1 : index
    %c0_13 = arith.constant 0 : index
    %c0_14 = arith.constant 0 : index
    %14 = vector.load %arg3[%c1_12, %c0_13, %c0_14] : memref<3x28x224xbf16, #tpu.memory_space<vmem>>, vector<1x28x224xbf16>
    %15 = vector.shape_cast %14 : vector<1x28x224xbf16> to vector<28x224xbf16>
    %cst_15 = arith.constant dense<0.000000e+00> : vector<56x224xf32>
    %16 = tpu.matmul %13, %15, %cst_15 {dimension_numbers = #tpu.dot_dimension_numbers<[1], [0], [0], [1], [0, 0, 1, 1], [], []>} : vector<56x28xbf16>, vector<28x224xbf16>, vector<56x224xf32> -> vector<56x224xf32>
    %17 = arith.addf %9, %16 : vector<56x224xf32>
    %c2 = arith.constant 2 : index
    %c0_16 = arith.constant 0 : index
    %c0_17 = arith.constant 0 : index
    %18 = vector.load %arg2[%c2, %c0_16, %c0_17] : memref<3x56x112xbf16, #tpu.memory_space<vmem>>, vector<1x56x112xbf16>
    %19 = vector.shape_cast %18 : vector<1x56x112xbf16> to vector<56x112xbf16>
    %cst_18 = arith.constant dense<0.000000e+00> : vector<56x28xf32>
    %20 = tpu.matmul %19, %0, %cst_18 {dimension_numbers = #tpu.dot_dimension_numbers<[1], [0], [0], [1], [0, 0, 1, 1], [], []>} : vector<56x112xbf16>, vector<112x28xbf16>, vector<56x28xf32> -> vector<56x28xf32>
    %21 = arith.truncf %20 : vector<56x28xf32> to vector<56x28xbf16>
    %c2_19 = arith.constant 2 : index
    %c0_20 = arith.constant 0 : index
    %c0_21 = arith.constant 0 : index
    %22 = vector.load %arg3[%c2_19, %c0_20, %c0_21] : memref<3x28x224xbf16, #tpu.memory_space<vmem>>, vector<1x28x224xbf16>
    %23 = vector.shape_cast %22 : vector<1x28x224xbf16> to vector<28x224xbf16>
    %cst_22 = arith.constant dense<0.000000e+00> : vector<56x224xf32>
    %24 = tpu.matmul %21, %23, %cst_22 {dimension_numbers = #tpu.dot_dimension_numbers<[1], [0], [0], [1], [0, 0, 1, 1], [], []>} : vector<56x28xbf16>, vector<28x224xbf16>, vector<56x224xf32> -> vector<56x224xf32>
    %25 = arith.addf %17, %24 : vector<56x224xf32>
    %c0_23 = arith.constant 0 : index
    %c0_24 = arith.constant 0 : index
    %26 = vector.load %arg4[%c0_23, %c0_24] : memref<1x224xf32, #tpu.memory_space<vmem>>, vector<1x224xf32>
    %27 = vector.broadcast %26 : vector<1x224xf32> to vector<56x224xf32>
    %28 = arith.addf %25, %27 : vector<56x224xf32>
    %cst_25 = arith.constant 0.000000e+00 : f32
    %29 = vector.broadcast %cst_25 : f32 to vector<56x224xf32>
    %30 = arith.maximumf %28, %29 : vector<56x224xf32>
    %31 = arith.truncf %30 : vector<56x224xf32> to vector<56x224xbf16>
    %cst_26 = arith.constant 0.000000e+00 : f32
    %32 = vector.broadcast %cst_26 : f32 to vector<28x224xf32>
    %c0_27 = arith.constant 0 : index
    %c0_28 = arith.constant 0 : index
    %c0_29 = arith.constant 0 : index
    %33 = vector.load %arg5[%c0_27, %c0_28, %c0_29] : memref<3x28x56xbf16, #tpu.memory_space<vmem>>, vector<1x28x56xbf16>
    %34 = vector.shape_cast %33 : vector<1x28x56xbf16> to vector<28x56xbf16>
    %cst_30 = arith.constant dense<0.000000e+00> : vector<28x224xf32>
    %35 = tpu.matmul %34, %31, %cst_30 {dimension_numbers = #tpu.dot_dimension_numbers<[1], [0], [0], [1], [0, 0, 1, 1], [], []>} : vector<28x56xbf16>, vector<56x224xbf16>, vector<28x224xf32> -> vector<28x224xf32>
    %36 = arith.truncf %35 : vector<28x224xf32> to vector<28x224xbf16>
    %c0_31 = arith.constant 0 : index
    %c0_32 = arith.constant 0 : index
    %c0_33 = arith.constant 0 : index
    %37 = vector.load %arg6[%c0_31, %c0_32, %c0_33] : memref<3x224x224xbf16, #tpu.memory_space<vmem>>, vector<1x224x224xbf16>
    %38 = vector.shape_cast %37 : vector<1x224x224xbf16> to vector<224x224xbf16>
    %cst_34 = arith.constant dense<0.000000e+00> : vector<28x224xf32>
    %39 = tpu.matmul %36, %38, %cst_34 {dimension_numbers = #tpu.dot_dimension_numbers<[1], [0], [0], [1], [0, 0, 1, 1], [], []>} : vector<28x224xbf16>, vector<224x224xbf16>, vector<28x224xf32> -> vector<28x224xf32>
    %40 = arith.addf %32, %39 : vector<28x224xf32>
    %c1_35 = arith.constant 1 : index
    %c0_36 = arith.constant 0 : index
    %c0_37 = arith.constant 0 : index
    %41 = vector.load %arg5[%c1_35, %c0_36, %c0_37] : memref<3x28x56xbf16, #tpu.memory_space<vmem>>, vector<1x28x56xbf16>
    %42 = vector.shape_cast %41 : vector<1x28x56xbf16> to vector<28x56xbf16>
    %cst_38 = arith.constant dense<0.000000e+00> : vector<28x224xf32>
    %43 = tpu.matmul %42, %31, %cst_38 {dimension_numbers = #tpu.dot_dimension_numbers<[1], [0], [0], [1], [0, 0, 1, 1], [], []>} : vector<28x56xbf16>, vector<56x224xbf16>, vector<28x224xf32> -> vector<28x224xf32>
    %44 = arith.truncf %43 : vector<28x224xf32> to vector<28x224xbf16>
    %c1_39 = arith.constant 1 : index
    %c0_40 = arith.constant 0 : index
    %c0_41 = arith.constant 0 : index
    %45 = vector.load %arg6[%c1_39, %c0_40, %c0_41] : memref<3x224x224xbf16, #tpu.memory_space<vmem>>, vector<1x224x224xbf16>
    %46 = vector.shape_cast %45 : vector<1x224x224xbf16> to vector<224x224xbf16>
    %cst_42 = arith.constant dense<0.000000e+00> : vector<28x224xf32>
    %47 = tpu.matmul %44, %46, %cst_42 {dimension_numbers = #tpu.dot_dimension_numbers<[1], [0], [0], [1], [0, 0, 1, 1], [], []>} : vector<28x224xbf16>, vector<224x224xbf16>, vector<28x224xf32> -> vector<28x224xf32>
    %48 = arith.addf %40, %47 : vector<28x224xf32>
    %c2_43 = arith.constant 2 : index
    %c0_44 = arith.constant 0 : index
    %c0_45 = arith.constant 0 : index
    %49 = vector.load %arg5[%c2_43, %c0_44, %c0_45] : memref<3x28x56xbf16, #tpu.memory_space<vmem>>, vector<1x28x56xbf16>
    %50 = vector.shape_cast %49 : vector<1x28x56xbf16> to vector<28x56xbf16>
    %cst_46 = arith.constant dense<0.000000e+00> : vector<28x224xf32>
    %51 = tpu.matmul %50, %31, %cst_46 {dimension_numbers = #tpu.dot_dimension_numbers<[1], [0], [0], [1], [0, 0, 1, 1], [], []>} : vector<28x56xbf16>, vector<56x224xbf16>, vector<28x224xf32> -> vector<28x224xf32>
    %52 = arith.truncf %51 : vector<28x224xf32> to vector<28x224xbf16>
    %c2_47 = arith.constant 2 : index
    %c0_48 = arith.constant 0 : index
    %c0_49 = arith.constant 0 : index
    %53 = vector.load %arg6[%c2_47, %c0_48, %c0_49] : memref<3x224x224xbf16, #tpu.memory_space<vmem>>, vector<1x224x224xbf16>
    %54 = vector.shape_cast %53 : vector<1x224x224xbf16> to vector<224x224xbf16>
    %cst_50 = arith.constant dense<0.000000e+00> : vector<28x224xf32>
    %55 = tpu.matmul %52, %54, %cst_50 {dimension_numbers = #tpu.dot_dimension_numbers<[1], [0], [0], [1], [0, 0, 1, 1], [], []>} : vector<28x224xbf16>, vector<224x224xbf16>, vector<28x224xf32> -> vector<28x224xf32>
    %56 = arith.addf %48, %55 : vector<28x224xf32>
    %c0_51 = arith.constant 0 : index
    %c0_52 = arith.constant 0 : index
    %57 = vector.load %arg7[%c0_51, %c0_52] : memref<1x224xf32, #tpu.memory_space<vmem>>, vector<1x224xf32>
    %58 = vector.broadcast %57 : vector<1x224xf32> to vector<28x224xf32>
    %59 = arith.addf %56, %58 : vector<28x224xf32>
    %cst_53 = arith.constant 0.000000e+00 : f32
    %60 = vector.broadcast %cst_53 : f32 to vector<28x224xf32>
    %61 = arith.maximumf %59, %60 : vector<28x224xf32>
    %62 = arith.truncf %61 : vector<28x224xf32> to vector<28x224xbf16>
    %cst_54 = arith.constant 0.000000e+00 : f32
    %63 = vector.broadcast %cst_54 : f32 to vector<12x192xf32>
    %c0_55 = arith.constant 0 : index
    %c0_56 = arith.constant 0 : index
    %c0_57 = arith.constant 0 : index
    %64 = vector.load %arg8[%c0_55, %c0_56, %c0_57] : memref<3x12x28xbf16, #tpu.memory_space<vmem>>, vector<1x12x28xbf16>
    %65 = vector.shape_cast %64 : vector<1x12x28xbf16> to vector<12x28xbf16>
    %cst_58 = arith.constant dense<0.000000e+00> : vector<12x224xf32>
    %66 = tpu.matmul %65, %62, %cst_58 {dimension_numbers = #tpu.dot_dimension_numbers<[1], [0], [0], [1], [0, 0, 1, 1], [], []>} : vector<12x28xbf16>, vector<28x224xbf16>, vector<12x224xf32> -> vector<12x224xf32>
    %67 = arith.truncf %66 : vector<12x224xf32> to vector<12x224xbf16>
    %c0_59 = arith.constant 0 : index
    %c0_60 = arith.constant 0 : index
    %c0_61 = arith.constant 0 : index
    %68 = vector.load %arg9[%c0_59, %c0_60, %c0_61] : memref<3x224x192xbf16, #tpu.memory_space<vmem>>, vector<1x224x192xbf16>
    %69 = vector.shape_cast %68 : vector<1x224x192xbf16> to vector<224x192xbf16>
    %cst_62 = arith.constant dense<0.000000e+00> : vector<12x192xf32>
    %70 = tpu.matmul %67, %69, %cst_62 {dimension_numbers = #tpu.dot_dimension_numbers<[1], [0], [0], [1], [0, 0, 1, 1], [], []>} : vector<12x224xbf16>, vector<224x192xbf16>, vector<12x192xf32> -> vector<12x192xf32>
    %71 = arith.addf %63, %70 : vector<12x192xf32>
    %c1_63 = arith.constant 1 : index
    %c0_64 = arith.constant 0 : index
    %c0_65 = arith.constant 0 : index
    %72 = vector.load %arg8[%c1_63, %c0_64, %c0_65] : memref<3x12x28xbf16, #tpu.memory_space<vmem>>, vector<1x12x28xbf16>
    %73 = vector.shape_cast %72 : vector<1x12x28xbf16> to vector<12x28xbf16>
    %cst_66 = arith.constant dense<0.000000e+00> : vector<12x224xf32>
    %74 = tpu.matmul %73, %62, %cst_66 {dimension_numbers = #tpu.dot_dimension_numbers<[1], [0], [0], [1], [0, 0, 1, 1], [], []>} : vector<12x28xbf16>, vector<28x224xbf16>, vector<12x224xf32> -> vector<12x224xf32>
    %75 = arith.truncf %74 : vector<12x224xf32> to vector<12x224xbf16>
    %c1_67 = arith.constant 1 : index
    %c0_68 = arith.constant 0 : index
    %c0_69 = arith.constant 0 : index
    %76 = vector.load %arg9[%c1_67, %c0_68, %c0_69] : memref<3x224x192xbf16, #tpu.memory_space<vmem>>, vector<1x224x192xbf16>
    %77 = vector.shape_cast %76 : vector<1x224x192xbf16> to vector<224x192xbf16>
    %cst_70 = arith.constant dense<0.000000e+00> : vector<12x192xf32>
    %78 = tpu.matmul %75, %77, %cst_70 {dimension_numbers = #tpu.dot_dimension_numbers<[1], [0], [0], [1], [0, 0, 1, 1], [], []>} : vector<12x224xbf16>, vector<224x192xbf16>, vector<12x192xf32> -> vector<12x192xf32>
    %79 = arith.addf %71, %78 : vector<12x192xf32>
    %c2_71 = arith.constant 2 : index
    %c0_72 = arith.constant 0 : index
    %c0_73 = arith.constant 0 : index
    %80 = vector.load %arg8[%c2_71, %c0_72, %c0_73] : memref<3x12x28xbf16, #tpu.memory_space<vmem>>, vector<1x12x28xbf16>
    %81 = vector.shape_cast %80 : vector<1x12x28xbf16> to vector<12x28xbf16>
    %cst_74 = arith.constant dense<0.000000e+00> : vector<12x224xf32>
    %82 = tpu.matmul %81, %62, %cst_74 {dimension_numbers = #tpu.dot_dimension_numbers<[1], [0], [0], [1], [0, 0, 1, 1], [], []>} : vector<12x28xbf16>, vector<28x224xbf16>, vector<12x224xf32> -> vector<12x224xf32>
    %83 = arith.truncf %82 : vector<12x224xf32> to vector<12x224xbf16>
    %c2_75 = arith.constant 2 : index
    %c0_76 = arith.constant 0 : index
    %c0_77 = arith.constant 0 : index
    %84 = vector.load %arg9[%c2_75, %c0_76, %c0_77] : memref<3x224x192xbf16, #tpu.memory_space<vmem>>, vector<1x224x192xbf16>
    %85 = vector.shape_cast %84 : vector<1x224x192xbf16> to vector<224x192xbf16>
    %cst_78 = arith.constant dense<0.000000e+00> : vector<12x192xf32>
    %86 = tpu.matmul %83, %85, %cst_78 {dimension_numbers = #tpu.dot_dimension_numbers<[1], [0], [0], [1], [0, 0, 1, 1], [], []>} : vector<12x224xbf16>, vector<224x192xbf16>, vector<12x192xf32> -> vector<12x192xf32>
    %87 = arith.addf %79, %86 : vector<12x192xf32>
    %c0_79 = arith.constant 0 : index
    %c0_80 = arith.constant 0 : index
    %88 = vector.load %arg10[%c0_79, %c0_80] : memref<1x192xf32, #tpu.memory_space<vmem>>, vector<1x192xf32>
    %89 = vector.broadcast %88 : vector<1x192xf32> to vector<12x192xf32>
    %90 = arith.addf %87, %89 : vector<12x192xf32>
    %cst_81 = arith.constant 0.000000e+00 : f32
    %91 = vector.broadcast %cst_81 : f32 to vector<12x192xf32>
    %92 = arith.maximumf %90, %91 : vector<12x192xf32>
    %93 = arith.truncf %92 : vector<12x192xf32> to vector<12x192xbf16>
    %cst_82 = arith.constant 0.000000e+00 : f32
    %94 = vector.broadcast %cst_82 : f32 to vector<4x256xf32>
    %c0_83 = arith.constant 0 : index
    %c0_84 = arith.constant 0 : index
    %c0_85 = arith.constant 0 : index
    %95 = vector.load %arg11[%c0_83, %c0_84, %c0_85] : memref<3x4x12xbf16, #tpu.memory_space<vmem>>, vector<1x4x12xbf16>
    %96 = vector.shape_cast %95 : vector<1x4x12xbf16> to vector<4x12xbf16>
    %cst_86 = arith.constant dense<0.000000e+00> : vector<4x192xf32>
    %97 = tpu.matmul %96, %93, %cst_86 {dimension_numbers = #tpu.dot_dimension_numbers<[1], [0], [0], [1], [0, 0, 1, 1], [], []>} : vector<4x12xbf16>, vector<12x192xbf16>, vector<4x192xf32> -> vector<4x192xf32>
    %98 = arith.truncf %97 : vector<4x192xf32> to vector<4x192xbf16>
    %c0_87 = arith.constant 0 : index
    %c0_88 = arith.constant 0 : index
    %c0_89 = arith.constant 0 : index
    %99 = vector.load %arg12[%c0_87, %c0_88, %c0_89] : memref<3x192x256xbf16, #tpu.memory_space<vmem>>, vector<1x192x256xbf16>
    %100 = vector.shape_cast %99 : vector<1x192x256xbf16> to vector<192x256xbf16>
    %cst_90 = arith.constant dense<0.000000e+00> : vector<4x256xf32>
    %101 = tpu.matmul %98, %100, %cst_90 {dimension_numbers = #tpu.dot_dimension_numbers<[1], [0], [0], [1], [0, 0, 1, 1], [], []>} : vector<4x192xbf16>, vector<192x256xbf16>, vector<4x256xf32> -> vector<4x256xf32>
    %102 = arith.addf %94, %101 : vector<4x256xf32>
    %c1_91 = arith.constant 1 : index
    %c0_92 = arith.constant 0 : index
    %c0_93 = arith.constant 0 : index
    %103 = vector.load %arg11[%c1_91, %c0_92, %c0_93] : memref<3x4x12xbf16, #tpu.memory_space<vmem>>, vector<1x4x12xbf16>
    %104 = vector.shape_cast %103 : vector<1x4x12xbf16> to vector<4x12xbf16>
    %cst_94 = arith.constant dense<0.000000e+00> : vector<4x192xf32>
    %105 = tpu.matmul %104, %93, %cst_94 {dimension_numbers = #tpu.dot_dimension_numbers<[1], [0], [0], [1], [0, 0, 1, 1], [], []>} : vector<4x12xbf16>, vector<12x192xbf16>, vector<4x192xf32> -> vector<4x192xf32>
    %106 = arith.truncf %105 : vector<4x192xf32> to vector<4x192xbf16>
    %c1_95 = arith.constant 1 : index
    %c0_96 = arith.constant 0 : index
    %c0_97 = arith.constant 0 : index
    %107 = vector.load %arg12[%c1_95, %c0_96, %c0_97] : memref<3x192x256xbf16, #tpu.memory_space<vmem>>, vector<1x192x256xbf16>
    %108 = vector.shape_cast %107 : vector<1x192x256xbf16> to vector<192x256xbf16>
    %cst_98 = arith.constant dense<0.000000e+00> : vector<4x256xf32>
    %109 = tpu.matmul %106, %108, %cst_98 {dimension_numbers = #tpu.dot_dimension_numbers<[1], [0], [0], [1], [0, 0, 1, 1], [], []>} : vector<4x192xbf16>, vector<192x256xbf16>, vector<4x256xf32> -> vector<4x256xf32>
    %110 = arith.addf %102, %109 : vector<4x256xf32>
    %c2_99 = arith.constant 2 : index
    %c0_100 = arith.constant 0 : index
    %c0_101 = arith.constant 0 : index
    %111 = vector.load %arg11[%c2_99, %c0_100, %c0_101] : memref<3x4x12xbf16, #tpu.memory_space<vmem>>, vector<1x4x12xbf16>
    %112 = vector.shape_cast %111 : vector<1x4x12xbf16> to vector<4x12xbf16>
    %cst_102 = arith.constant dense<0.000000e+00> : vector<4x192xf32>
    %113 = tpu.matmul %112, %93, %cst_102 {dimension_numbers = #tpu.dot_dimension_numbers<[1], [0], [0], [1], [0, 0, 1, 1], [], []>} : vector<4x12xbf16>, vector<12x192xbf16>, vector<4x192xf32> -> vector<4x192xf32>
    %114 = arith.truncf %113 : vector<4x192xf32> to vector<4x192xbf16>
    %c2_103 = arith.constant 2 : index
    %c0_104 = arith.constant 0 : index
    %c0_105 = arith.constant 0 : index
    %115 = vector.load %arg12[%c2_103, %c0_104, %c0_105] : memref<3x192x256xbf16, #tpu.memory_space<vmem>>, vector<1x192x256xbf16>
    %116 = vector.shape_cast %115 : vector<1x192x256xbf16> to vector<192x256xbf16>
    %cst_106 = arith.constant dense<0.000000e+00> : vector<4x256xf32>
    %117 = tpu.matmul %114, %116, %cst_106 {dimension_numbers = #tpu.dot_dimension_numbers<[1], [0], [0], [1], [0, 0, 1, 1], [], []>} : vector<4x192xbf16>, vector<192x256xbf16>, vector<4x256xf32> -> vector<4x256xf32>
    %118 = arith.addf %110, %117 : vector<4x256xf32>
    %c0_107 = arith.constant 0 : index
    %c0_108 = arith.constant 0 : index
    %119 = vector.load %arg13[%c0_107, %c0_108] : memref<1x256xf32, #tpu.memory_space<vmem>>, vector<1x256xf32>
    %120 = vector.broadcast %119 : vector<1x256xf32> to vector<4x256xf32>
    %121 = arith.addf %118, %120 : vector<4x256xf32>
    %cst_109 = arith.constant 0.000000e+00 : f32
    %122 = vector.broadcast %cst_109 : f32 to vector<4x256xf32>
    %123 = arith.maximumf %121, %122 : vector<4x256xf32>
    %124 = arith.truncf %123 : vector<4x256xf32> to vector<4x256xbf16>
    %c0_110 = arith.constant 0 : index
    %c0_111 = arith.constant 0 : index
    %125 = vector.load %arg14[%c0_110, %c0_111] : memref<256x8xbf16, #tpu.memory_space<vmem>>, vector<256x8xbf16>
    %cst_112 = arith.constant dense<0.000000e+00> : vector<4x8xf32>
    %126 = tpu.matmul %124, %125, %cst_112 {dimension_numbers = #tpu.dot_dimension_numbers<[1], [0], [0], [1], [0, 0, 1, 1], [], []>} : vector<4x256xbf16>, vector<256x8xbf16>, vector<4x8xf32> -> vector<4x8xf32>
    %c0_113 = arith.constant 0 : index
    %c0_114 = arith.constant 0 : index
    %127 = vector.load %arg15[%c0_113, %c0_114] : memref<1x8xf32, #tpu.memory_space<vmem>>, vector<1x8xf32>
    %128 = vector.broadcast %127 : vector<1x8xf32> to vector<4x8xf32>
    %129 = arith.addf %126, %128 : vector<4x8xf32>
    %c0_115 = arith.constant 0 : index
    %c0_116 = arith.constant 0 : index
    %130 = vector.load %arg16[%c0_115, %c0_116] : memref<256x8xbf16, #tpu.memory_space<vmem>>, vector<256x8xbf16>
    %cst_117 = arith.constant dense<0.000000e+00> : vector<4x8xf32>
    %131 = tpu.matmul %124, %130, %cst_117 {dimension_numbers = #tpu.dot_dimension_numbers<[1], [0], [0], [1], [0, 0, 1, 1], [], []>} : vector<4x256xbf16>, vector<256x8xbf16>, vector<4x8xf32> -> vector<4x8xf32>
    %c0_118 = arith.constant 0 : index
    %c0_119 = arith.constant 0 : index
    %132 = vector.load %arg17[%c0_118, %c0_119] : memref<1x8xf32, #tpu.memory_space<vmem>>, vector<1x8xf32>
    %133 = vector.broadcast %132 : vector<1x8xf32> to vector<4x8xf32>
    %134 = arith.addf %131, %133 : vector<4x8xf32>
    %135 = math.exp %134 : vector<4x8xf32>
    %c0_120 = arith.constant 0 : index
    %c0_121 = arith.constant 0 : index
    %136 = vector.load %arg1[%c0_120, %c0_121] : memref<4x8xf32, #tpu.memory_space<vmem>>, vector<4x8xf32>
    %137 = arith.mulf %135, %136 : vector<4x8xf32>
    %138 = arith.addf %129, %137 : vector<4x8xf32>
    %139 = arith.mulf %135, %135 : vector<4x8xf32>
    %140 = arith.mulf %129, %129 : vector<4x8xf32>
    %141 = arith.addf %139, %140 : vector<4x8xf32>
    %142 = arith.subf %141, %134 : vector<4x8xf32>
    %cst_122 = arith.constant 1.000000e+00 : f32
    %143 = vector.broadcast %cst_122 : f32 to vector<4x8xf32>
    %144 = arith.subf %142, %143 : vector<4x8xf32>
    %cst_123 = arith.constant 5.000000e-01 : f32
    %145 = vector.broadcast %cst_123 : f32 to vector<4x8xf32>
    %146 = arith.mulf %144, %145 : vector<4x8xf32>
    %147 = vector.shape_cast %146 : vector<4x8xf32> to vector<1x4x8xf32>
    %cst_124 = arith.constant dense<0.000000e+00> : vector<1xf32>
    %148 = vector.multi_reduction <add>, %147, %cst_124 [1, 2] : vector<1x4x8xf32> to vector<1xf32>
    %149 = vector.shape_cast %148 : vector<1xf32> to vector<1x1x1xf32>
    %150 = vector.extract %149[0, 0, 0] : f32 from vector<1x1x1xf32>
    %151 = vector.broadcast %150 : f32 to vector<1x1xf32>
    %cst_125 = arith.constant 0.000000e+00 : f32
    %152 = vector.broadcast %cst_125 : f32 to vector<4x128xf32>
    %c0_126 = arith.constant 0 : index
    %c0_127 = arith.constant 0 : index
    %153 = vector.load %arg18[%c0_126, %c0_127] : memref<4x128xf32, #tpu.memory_space<vmem>>, vector<4x128xf32>
    tpu.vector_store %arg18[%c0_126, %c0_127], %152 {strides = array<i32>} : memref<4x128xf32, #tpu.memory_space<vmem>>, vector<4x128xf32>,
    %c0_128 = arith.constant 0 : index
    %c0_129 = arith.constant 0 : index
    %154 = vector.load %arg18[%c0_128, %c0_129] : memref<4x128xf32, #tpu.memory_space<vmem>>, vector<4x8xf32>
    tpu.vector_store %arg18[%c0_128, %c0_129], %138 {strides = array<i32>} : memref<4x128xf32, #tpu.memory_space<vmem>>, vector<4x8xf32>,
    %155 = vector.shape_cast %151 : vector<1x1xf32> to vector<1x1xf32>
    %156 = vector.broadcast %155 : vector<1x1xf32> to vector<4x1xf32>
    %c0_130 = arith.constant 0 : index
    %c8 = arith.constant 8 : index
    %157 = vector.load %arg18[%c0_130, %c8] : memref<4x128xf32, #tpu.memory_space<vmem>>, vector<4x1xf32>
    tpu.vector_store %arg18[%c0_130, %c8], %156 {strides = array<i32>} : memref<4x128xf32, #tpu.memory_space<vmem>>, vector<4x1xf32>,
    return
  }
}

</mosaic_0001>

<bundles_post_ra>
// kernel: mnist_encoder_forward.1
= control target key start
LH: loop header
LB: loop body
LE: loop exit
PB: predicated region body
PF: predicated region fallthrough
CT: control target
= control target key end

     0   :  { %vm141_vm0 = vcmask 916480   ;;  %vm368_vm1 = vcmask 1045504   ;;  %v4917_v25 = vmov 0   ;;  %vm355_vm2 = vcmask 228352   ;;  %s6305_s0 = inlined_call_operand.vmem [shape: bf16[112,28], index: 0, kind: input, shape index: {}]   ;;  %s6306_s2 = inlined_call_operand.vmem [shape: bf16[3,56,112], index: 2, kind: input, shape index: {}]   ;;  %s6307_s3 = inlined_call_operand.vmem [shape: bf16[3,28,224], index: 3, kind: input, shape index: {}]   ;;  %s6308_s5 = inlined_call_operand.vmem [shape: bf16[3,28,56], index: 5, kind: input, shape index: {}]   ;;  %s6309_s6 = inlined_call_operand.vmem [shape: bf16[3,224,224], index: 6, kind: input, shape index: {}]   ;;  %s6310_s4 = inlined_call_operand.vmem [shape: f32[1,224], index: 4, kind: input, shape index: {}]   ;;  %s6311_s8 = inlined_call_operand.vmem [shape: bf16[3,12,28], index: 8, kind: input, shape index: {}]   ;;  %s6312_s9 = inlined_call_operand.vmem [shape: bf16[3,224,192], index: 9, kind: input, shape index: {}]   ;;  %s6313_s7 = inlined_call_operand.vmem [shape: f32[1,224], index: 7, kind: input, shape index: {}]   ;;  %s6314_s12 = inlined_call_operand.vmem [shape: bf16[3,192,256], index: 12, kind: input, shape index: {}]   ;;  %s6315_s10 = inlined_call_operand.vmem [shape: f32[1,192], index: 10, kind: input, shape index: {}]   ;;  %s6316_s11 = inlined_call_operand.vmem [shape: bf16[3,4,12], index: 11, kind: input, shape index: {}]   ;;  %s6317_s14 = inlined_call_operand.vmem [shape: bf16[256,8], index: 14, kind: input, shape index: {}]   ;;  %s6318_s16 = inlined_call_operand.vmem [shape: bf16[256,8], index: 16, kind: input, shape index: {}]   ;;  %s6319_s13 = inlined_call_operand.vmem [shape: f32[1,256], index: 13, kind: input, shape index: {}]   ;;  %s6320_s18 = inlined_call_operand.vmem [shape: f32[4,128], index: 18, kind: output, shape index: {}]   ;;  %s6321_s17 = inlined_call_operand.vmem [shape: f32[1,8], index: 17, kind: input, shape index: {}]   ;;  %s6322_s15 = inlined_call_operand.vmem [shape: f32[1,8], index: 15, kind: input, shape index: {}]   ;;  %s6323_s1 = inlined_call_operand.vmem [shape: f32[4,8], index: 1, kind: input, shape index: {}]  }
   0x1   :  { %6327 = sst [smem:[#allocation2_spill]] %s6305_s0  ;;  %vm854_vm3 = vcmask 1043456   ;;  %vm847_vm4 = vcmask 457728   ;;  %vm1193_vm5 = vcmask 785408   ;;  %vm2642_vm6 = vcmask 97280  }
   0x2   :  { %6328 = sst [smem:[#allocation3_spill]] %s6306_s2  ;;  %vm2912_vm7 = vcmask 523264   ;;  %vm3739_vm8 = vcmask 60416   ;;  %vm3753_vm9 = vcmask 68672  }
   0x3   :  { %6329 = sst [smem:[#allocation4_spill]] %s6307_s3 }
   0x4   :  { %s6330_s29 = sld [smem:[#allocation2_spill]] }
   0x5   :  { %s6331_s23 = sld [smem:[#allocation3_spill]] }
   0x6   :  { %s6332_s2 = sld [smem:[#allocation4_spill]] }
   0xa   :  { %v5017_v0 = vld [vmem:[%s6330_s29 + $0x30] sm:$0xff]   ;;  %v5022_v1 = vld [vmem:[%s6330_s29 + $0x28] sm:$0xff]   ;;  %v5033_v2 = vld [vmem:[%s6330_s29 + $0x20] sm:$0xff]  }
   0xb   :  { %4407 = vmatprep.subr.bf16.mxu0 %v5017_v0  ;;  %4429 = vmatprep.subr.bf16.mxu1 %v5017_v0  ;;  %v5038_v3 = vld [vmem:[%s6330_s29 + $0x18] sm:$0xff]   ;;  %v4484_v4 = vld [vmem:[%s6331_s23] sm:$0xff]   ;;  %v5059_v6 = vld [vmem:[%s6330_s29 + $0x10] sm:$0xff]  }
   0xc   :  { %4408 = vmatpush3.bf16.msra.mxu0 %v5017_v0  ;;  %4430 = vmatpush3.bf16.msra.mxu1 %v5017_v0  ;;  %v4485_v5 = vld [vmem:[%s6331_s23 + $0x1c] sm:$0xff]   ;;  %v5068_v7 = vld [vmem:[%s6330_s29 + $0x8] sm:$0xff]   ;;  %v4490_v12 = vld [vmem:[%s6331_s23 + $0x10] sm:$0xff]  }
   0xd   :  { %4409 = vmatprep.subr.bf16.mxu0 %v5022_v1  ;;  %4431 = vmatprep.subr.bf16.mxu1 %v5022_v1  ;;  %v5077_v8 = vld [vmem:[%s6330_s29] sm:$0xff]   ;;  %v4486_v9 = vld [vmem:[%s6331_s23 + $0x8] sm:$0xff]   ;;  %v4489_v13 = vld [vmem:[%s6331_s23 + $0x34] ss:$0 sps:$4 sm:$0xff]  }
   0xe   :  { %4421 = vmatprep.mubr.msk.bf16.mxu0 %vm141_vm0, %v4484_v4  ;;  %4443 = vmatprep.mubr.msk.bf16.mxu1 %vm141_vm0, %v4485_v5  ;;  %v4487_v10 = vld [vmem:[%s6331_s23 + $0x24] sm:$0xff]   ;;  %v4488_v11 = vld [vmem:[%s6331_s23 + $0x2c] sm:$0xff]   ;;  %v4491_v14 = vld [vmem:[%s6331_s23 + $0x18] ss:$0 sps:$4 sm:$0xff]  }
   0xf   :  { %v4492_v15 = vld [vmem:[%s6332_s2 + $0x34] ss:$8 sps:$4 sm:$0x3f]   ;;  %v4496_v17 = vld [vmem:[%s6332_s2 + $0x30] ss:$8 sps:$4 sm:$0x3f]  }
  0x10   :  { %4410 = vmatpush3.bf16.msra.mxu0 %v5022_v1  ;;  %4432 = vmatpush3.bf16.msra.mxu1 %v5022_v1  ;;  %v4494_v16 = vld [vmem:[%s6332_s2 + $0x14] ss:$8 sps:$4 sm:$0x3f]   ;;  %v4497_v18 = vld [vmem:[%s6332_s2 + $0x10] ss:$8 sps:$4 sm:$0x3f]  }
  0x11   :  { %4411 = vmatprep.subr.bf16.mxu0 %v5033_v2  ;;  %4433 = vmatprep.subr.bf16.mxu1 %v5033_v2  ;;  %v370_v19 = vsel %vm368_vm1, %v4496_v17, 0  ;;  %v4500_v20 = vld [vmem:[%s6332_s2 + $0x24] ss:$8 sps:$4 sm:$0xff]   ;;  %v477_v22 = vsel %vm368_vm1, %v4497_v18, 0  ;;  %v4498_v23 = vld [vmem:[%s6332_s2 + $0x20] ss:$8 sps:$4 sm:$0xff]  }
  0x12   :  { %v4503_v21 = vld [vmem:[%s6332_s2 + $0x4] ss:$8 sps:$4 sm:$0xff]   ;;  %v4501_v24 = vld [vmem:[%s6332_s2] ss:$8 sps:$4 sm:$0xff]   ;;  %v4504_v49 = vld [vmem:[%s6331_s23 + $0x38] sm:$0xff]  }
  0x13   :  { %v4505_v51 = vld [vmem:[%s6331_s23 + $0x40] sm:$0xff]   ;;  %v4506_v52 = vld [vmem:[%s6331_s23 + $0x48] sm:$0xff]   ;;  %v4507_v53 = vld [vmem:[%s6331_s23 + $0x50] ss:$0 sps:$4 sm:$0xff]  }
  0x14   :  { %4412 = vmatpush3.bf16.msra.mxu0 %v5033_v2  ;;  %4434 = vmatpush3.bf16.msra.mxu1 %v5033_v2  ;;  %v4508_v54 = vld [vmem:[%s6332_s2 + $0x54] ss:$8 sps:$4 sm:$0x3f]   ;;  %v4510_v55 = vld [vmem:[%s6332_s2 + $0x50] ss:$8 sps:$4 sm:$0x3f]  }
  0x15   :  { %4413 = vmatprep.subr.bf16.mxu0 %v5038_v3  ;;  %4435 = vmatprep.subr.bf16.mxu1 %v5038_v3  ;;  %v695_v56 = vsel %vm368_vm1, %v4510_v55, 0  ;;  %v4511_v57 = vld [vmem:[%s6332_s2 + $0x40] ss:$8 sps:$4 sm:$0xff]   ;;  %v4513_v58 = vld [vmem:[%s6332_s2 + $0x44] ss:$8 sps:$4 sm:$0xff]  }
  0x18   :  { %4414 = vmatpush3.bf16.msra.mxu0 %v5038_v3  ;;  %4436 = vmatpush3.bf16.msra.mxu1 %v5038_v3 }
  0x19   :  { %4415 = vmatprep.subr.bf16.mxu0 %v5059_v6  ;;  %4437 = vmatprep.subr.bf16.mxu1 %v5059_v6 }
  0x1c   :  { %4416 = vmatpush3.bf16.msra.mxu0 %v5059_v6  ;;  %4438 = vmatpush3.bf16.msra.mxu1 %v5059_v6 }
  0x1d   :  { %4417 = vmatprep.subr.bf16.mxu0 %v5068_v7  ;;  %4439 = vmatprep.subr.bf16.mxu1 %v5068_v7 }
  0x20   :  { %4418 = vmatpush3.bf16.msra.mxu0 %v5068_v7  ;;  %4440 = vmatpush3.bf16.msra.mxu1 %v5068_v7 }
  0x21   :  { %4419 = vmatprep.subr.bf16.mxu0 %v5077_v8  ;;  %4441 = vmatprep.subr.bf16.mxu1 %v5077_v8 }
  0x24   :  { %4420 = vmatpush3.bf16.msra.mxu0 %v5077_v8  ;;  %4442 = vmatpush3.bf16.msra.mxu1 %v5077_v8 }
  0x25   :  { %3797 = vmatprep.subr.msk.bf16.mxu0 %vm368_vm1, %v4492_v15  ;;  %3806 = vmatprep.subr.msk.bf16.mxu1 %vm368_vm1, %v4494_v16 }
  0x27   :  { %4422 = vmatmul.mubr.msk.bf16.vlgmr.msra.gmra.mxu0 %vm141_vm0, %v4486_v9  ;;  %4444 = vmatmul.mubr.msk.bf16.vlgmr.msra.gmra.mxu1 %vm141_vm0, %v4487_v10 }
  0x28   :  { %4447 = vmatprep.mubr.msk.bf16.mxu1 %vm141_vm0, %v4488_v11  ;;  %4425 = vmatprep.mubr.msk.bf16.mxu0 %vm141_vm0, %v4490_v12 }
  0x29   :  { %388 = vmatpush1.bf16.msra.mxu0 %v370_v19  ;;  %495 = vmatpush1.bf16.msra.mxu1 %v477_v22 }
  0x2a   :  { %389 = vmatprep.subr.bf16.mxu0 %v4500_v20  ;;  %496 = vmatprep.subr.bf16.mxu1 %v4503_v21 }
  0x2d   :  { %390 = vmatpush1.bf16.msra.mxu0 %v4498_v23  ;;  %497 = vmatpush1.bf16.msra.mxu1 %v4501_v24 }
  0x2e   :  { %4451 = vmatprep.subr.bf16.mxu0 %v5017_v0  ;;  %3834 = vmatprep.subr.msk.bf16.mxu1 %vm368_vm1, %v4508_v54  ;;  %v787_v54 = vlaneseq }
  0x2f   :  { %4448 = vmatmul.mubr.msk.bf16.gmra.mxu1 %vm141_vm0, %v4489_v13  ;;  %4426 = vmatmul.mubr.msk.bf16.gmra.mxu0 %vm141_vm0, %v4491_v14 }
  0x30   :  { %407 = vmatprep.mubr.bf16.mxu0 %v4917_v25  ;;  %514 = vmatprep.mubr.bf16.mxu1 %v4917_v25  ;;  %v788_v55 = vshrl.u32 %v787_v54, 7 }
  0xe7   :  { %v4423_v26 = vpop.f32.mrf.mxu0  ;;  %v4445_v27 = vpop.f32.mrf.mxu1 }
  0xe9   :  { %v188_v28 = vpop.f32.mrf.mxu0  ;;  %v298_v29 = vpop.f32.mrf.mxu1 }
  0xeb   :  { %v4424_v30 = vpop.f32.mrf.mxu0  ;;  %v4446_v31 = vpop.f32.mrf.mxu1 }
  0xec   :  { %v219_v42 = vpack.c.bf16 %v4424_v30, %v4423_v26  ;;  %v329_v43 = vpack.c.bf16 %v4446_v31, %v4445_v27 }
  0xed   :  { %v191_v32 = vpop.f32.mrf.mxu0  ;;  %v301_v33 = vpop.f32.mrf.mxu1 }
  0xee   :  { %v218_v34 = vpack.c.bf16 %v191_v32, %v188_v28  ;;  %v328_v35 = vpack.c.bf16 %v301_v33, %v298_v29 }
  0xef   :  { %v4449_v36 = vpop.f32.mrf.mxu1  ;;  %v4427_v37 = vpop.f32.mrf.mxu0 }
  0xf0   :  { %3798 = vmatmul.mubr.msk.bf16.vlgmr.msra.gmra.mxu0 %vm355_vm2, %v328_v35  ;;  %3807 = vmatmul.mubr.msk.bf16.vlgmr.msra.gmra.mxu1 %vm355_vm2, %v218_v34  ;;  %v221_v48 = vpack.c.bf16 %v4427_v37, %v4427_v37  ;;  %v331_v50 = vpack.c.bf16 %v4449_v36, %v4449_v36 }
  0xf1   :  { %v314_v38 = vpop.f32.mrf.mxu1  ;;  %4452 = vmatpush3.bf16.msra.mxu0 %v5017_v0  ;;  %417 = vmatprep.mubr.bf16.mxu0 %v4917_v25  ;;  %v204_v39 = vpop.f32.mrf.mxu0 }
  0xf2   :  { %524 = vmatprep.mubr.bf16.mxu1 %v4917_v25  ;;  %4453 = vmatprep.subr.bf16.mxu0 %v5022_v1 }
  0xf3   :  { %v4450_v40 = vpop.f32.mrf.mxu1  ;;  %v4428_v41 = vpop.f32.mrf.mxu0  ;;  %713 = vmatpush1.bf16.msra.mxu1 %v695_v56  ;;  %v4560_v56 = vld [vmem:[%s6309_s6 + $0x150] ss:$8 sps:$4 sm:$0xff]  }
  0xf4   :  { %714 = vmatprep.subr.bf16.mxu1 %v4513_v58  ;;  %v4565_v58 = vld [vmem:[%s6309_s6 + $0x144] ss:$8 sps:$4 sm:$0xff]  }
  0xf5   :  { %4454 = vmatpush3.bf16.msra.mxu0 %v5022_v1  ;;  %v207_v44 = vpop.f32.mrf.mxu0  ;;  %v317_v45 = vpop.f32.mrf.mxu1 }
  0xf6   :  { %4455 = vmatprep.subr.bf16.mxu0 %v5033_v2  ;;  %v220_v46 = vpack.c.bf16 %v207_v44, %v204_v39  ;;  %v330_v47 = vpack.c.bf16 %v317_v45, %v314_v38 }
  0xf7   :  { %715 = vmatpush1.bf16.msra.mxu1 %v4511_v57  ;;  %v4562_v57 = vld [vmem:[%s6309_s6 + $0x154] ss:$8 sps:$4 sm:$0xff]  }
  0xf8   :  { %3799 = vmatmul.mubr.msk.bf16.gmra.mxu0 %vm355_vm2, %v329_v43  ;;  %3808 = vmatmul.mubr.msk.bf16.gmra.mxu1 %vm355_vm2, %v219_v42 }
  0xf9   :  { %4456 = vmatpush3.bf16.msra.mxu0 %v5033_v2  ;;  %427 = vmatprep.mubr.bf16.mxu0 %v4917_v25 }
  0xfa   :  { %534 = vmatprep.mubr.bf16.mxu1 %v4917_v25  ;;  %4457 = vmatprep.subr.bf16.mxu0 %v5038_v3 }
  0xfb   :  { %1200 = vmatprep.subr.bf16.mxu1 %v4562_v57 }
  0xfd   :  { %4458 = vmatpush3.bf16.msra.mxu0 %v5038_v3 }
  0xfe   :  { %4459 = vmatprep.subr.bf16.mxu0 %v5059_v6 }
 0x100   :  { %3800 = vmatmul.mubr.msk.bf16.gmra.mxu0 %vm355_vm2, %v330_v47  ;;  %3809 = vmatmul.mubr.msk.bf16.gmra.mxu1 %vm355_vm2, %v220_v46 }
 0x101   :  { %4460 = vmatpush3.bf16.msra.mxu0 %v5059_v6  ;;  %437 = vmatprep.mubr.bf16.mxu0 %v4917_v25 }
 0x102   :  { %544 = vmatprep.mubr.bf16.mxu1 %v4917_v25  ;;  %4461 = vmatprep.subr.bf16.mxu0 %v5068_v7 }
 0x105   :  { %4462 = vmatpush3.bf16.msra.mxu0 %v5068_v7 }
 0x106   :  { %4463 = vmatprep.subr.bf16.mxu0 %v5077_v8 }
 0x108   :  { %3801 = vmatmul.mubr.msk.bf16.gmra.mxu0 %vm355_vm2, %v331_v50  ;;  %3810 = vmatmul.mubr.msk.bf16.gmra.mxu1 %vm355_vm2, %v221_v48 }
 0x109   :  { %4464 = vmatpush3.bf16.msra.mxu0 %v5077_v8  ;;  %4465 = vmatprep.mubr.msk.bf16.mxu0 %vm141_vm0, %v4504_v49 }
 0x10a   :  { %732 = vmatprep.mubr.bf16.mxu1 %v4917_v25 }
 0x110   :  { %4466 = vmatmul.mubr.msk.bf16.vlgmr.msra.gmra.mxu0 %vm141_vm0, %v4505_v51 }
 0x111   :  { %4469 = vmatprep.mubr.msk.bf16.mxu0 %vm141_vm0, %v4506_v52 }
 0x118   :  { %4470 = vmatmul.mubr.msk.bf16.gmra.mxu0 %vm141_vm0, %v4507_v53 }
 0x119   :  { %893 = vmatprep.mubr.bf16.mxu0 %v4917_v25 }
 0x1b0   :  { %v409_v59 = vpop.f32.mrf.mxu0  ;;  %v516_v60 = vpop.f32.mrf.mxu1 }
 0x1b1   :  { %v5199_v61 = vadd.f32 %v516_v60, %v409_v59  ;;  %v4563_v59 = vld [vmem:[%s6309_s6 + $0x140] ss:$8 sps:$4 sm:$0xff]   ;;  %v5246_v60 = vsub.s32 0, %v788_v55 }
 0x1b2   :  { %v411_v62 = vpop.f32.mrf.mxu0  ;;  %v518_v63 = vpop.f32.mrf.mxu1 }
 0x1b3   :  { %v5201_v0 = vadd.f32 %v518_v63, %v411_v62  ;;  %v4568_v62 = vld [vmem:[%s6309_s6 + $0x134] ss:$8 sps:$4 sm:$0xff]   ;;  %v785_v63 = vld [vmem:[%s6310_s4] sm:$0x3] }
 0x1b4   :  { %v413_v1 = vpop.f32.mrf.mxu0  ;;  %v520_v2 = vpop.f32.mrf.mxu1 }
 0x1b5   :  { %v5203_v3 = vadd.f32 %v520_v2, %v413_v1  ;;  %v5254_v1 = vsub.s32 1, %v788_v55 }
 0x1b6   :  { %v415_v4 = vpop.f32.mrf.mxu0  ;;  %v522_v5 = vpop.f32.mrf.mxu1 }
 0x1b7   :  { %v5205_v6 = vadd.f32 %v522_v5, %v415_v4  ;;  %v4566_v4 = vld [vmem:[%s6309_s6 + $0x130] ss:$8 sps:$4 sm:$0xff]  }
 0x1b8   :  { %v419_v7 = vpop.f32.mrf.mxu0  ;;  %v526_v8 = vpop.f32.mrf.mxu1 }
 0x1b9   :  { %v5207_v9 = vadd.f32 %v526_v8, %v419_v7  ;;  %v5261_v7 = vrot.slane %v785_v63, %v5246_v60  ;;  %v4571_v8 = vld [vmem:[%s6309_s6 + $0x124] ss:$8 sps:$4 sm:$0xff]  }
 0x1ba   :  { %v421_v10 = vpop.f32.mrf.mxu0  ;;  %v528_v11 = vpop.f32.mrf.mxu1 }
 0x1bb   :  { %v5209_v12 = vadd.f32 %v528_v11, %v421_v10 }
 0x1bc   :  { %v423_v13 = vpop.f32.mrf.mxu0  ;;  %v530_v14 = vpop.f32.mrf.mxu1 }
 0x1bd   :  { %v5211_v15 = vadd.f32 %v530_v14, %v423_v13  ;;  %v5268_v13 = vrot.slane %v785_v63, %v5254_v1 }
 0x1be   :  { %v425_v16 = vpop.f32.mrf.mxu0  ;;  %v532_v17 = vpop.f32.mrf.mxu1 }
 0x1bf   :  { %v5213_v18 = vadd.f32 %v532_v17, %v425_v16 }
 0x1c0   :  { %v429_v19 = vpop.f32.mrf.mxu0  ;;  %v536_v20 = vpop.f32.mrf.mxu1 }
 0x1c1   :  { %v5215_v21 = vadd.f32 %v536_v20, %v429_v19  ;;  %v4574_v19 = vld [vmem:[%s6309_s6 + $0x114] ss:$8 sps:$4 sm:$0xff]  }
 0x1c2   :  { %v431_v22 = vpop.f32.mrf.mxu0  ;;  %v538_v23 = vpop.f32.mrf.mxu1 }
 0x1c3   :  { %v5217_v24 = vadd.f32 %v538_v23, %v431_v22 }
 0x1c4   :  { %v433_v26 = vpop.f32.mrf.mxu0  ;;  %v540_v27 = vpop.f32.mrf.mxu1 }
 0x1c5   :  { %v5219_v28 = vadd.f32 %v540_v27, %v433_v26  ;;  %v4572_v27 = vld [vmem:[%s6309_s6 + $0x110] ss:$8 sps:$4 sm:$0xff]  }
 0x1c6   :  { %v435_v29 = vpop.f32.mrf.mxu0  ;;  %v542_v30 = vpop.f32.mrf.mxu1 }
 0x1c7   :  { %v5221_v31 = vadd.f32 %v542_v30, %v435_v29 }
 0x1c8   :  { %v439_v32 = vpop.f32.mrf.mxu0  ;;  %v546_v33 = vpop.f32.mrf.mxu1 }
 0x1c9   :  { %v5223_v34 = vadd.f32 %v546_v33, %v439_v32  ;;  %v4577_v33 = vld [vmem:[%s6309_s6 + $0x104] ss:$8 sps:$4 sm:$0xff]  }
 0x1ca   :  { %v441_v35 = vpop.f32.mrf.mxu0  ;;  %v548_v36 = vpop.f32.mrf.mxu1 }
 0x1cb   :  { %v5225_v37 = vadd.f32 %v548_v36, %v441_v35 }
 0x1cc   :  { %v443_v38 = vpop.f32.mrf.mxu0  ;;  %v550_v39 = vpop.f32.mrf.mxu1 }
 0x1ce   :  { %v444_v40 = vpop.f32.mrf.mxu0  ;;  %v551_v41 = vpop.f32.mrf.mxu1 }
 0x1cf   :  { %v4575_v41 = vld [vmem:[%s6309_s6 + $0x100] ss:$8 sps:$4 sm:$0xff]  }
 0x1d0   :  { %v4467_v42 = vpop.f32.mrf.mxu0 }
 0x1d2   :  { %v625_v43 = vpop.f32.mrf.mxu0 }
 0x1d4   :  { %v4468_v44 = vpop.f32.mrf.mxu0 }
 0x1d5   :  { %v656_v50 = vpack.c.bf16 %v4468_v44, %v4467_v42  ;;  %v4580_v44 = vld [vmem:[%s6309_s6 + $0xf4] ss:$8 sps:$4 sm:$0xff]  }
 0x1d6   :  { %v628_v45 = vpop.f32.mrf.mxu0 }
 0x1d7   :  { %v655_v46 = vpack.c.bf16 %v628_v45, %v625_v43 }
 0x1d8   :  { %v4471_v47 = vpop.f32.mrf.mxu0 }
 0x1d9   :  { %3835 = vmatmul.mubr.msk.bf16.vlgmr.msra.gmra.mxu1 %vm355_vm2, %v655_v46  ;;  %v658_v53 = vpack.c.bf16 %v4471_v47, %v4471_v47 }
 0x1da   :  { %v641_v48 = vpop.f32.mrf.mxu0  ;;  %742 = vmatprep.mubr.bf16.mxu1 %v4917_v25  ;;  %1201 = vmatpush1.bf16.msra.mxu1 %v4560_v56 }
 0x1db   :  { %1202 = vmatprep.subr.bf16.mxu1 %v4565_v58 }
 0x1dc   :  { %v4472_v49 = vpop.f32.mrf.mxu0 }
 0x1de   :  { %v644_v51 = vpop.f32.mrf.mxu0  ;;  %1203 = vmatpush1.bf16.msra.mxu1 %v4563_v59  ;;  %v4581_v59 = vld [vmem:[%s6309_s6 + $0xe0] ss:$8 sps:$4 sm:$0xff]  }
 0x1df   :  { %v657_v52 = vpack.c.bf16 %v644_v51, %v641_v48  ;;  %1204 = vmatprep.subr.bf16.mxu1 %v4568_v62 }
 0x1e1   :  { %3836 = vmatmul.mubr.msk.bf16.gmra.mxu1 %vm355_vm2, %v656_v50 }
 0x1e2   :  { %752 = vmatprep.mubr.bf16.mxu1 %v4917_v25  ;;  %1205 = vmatpush1.bf16.msra.mxu1 %v4566_v4 }
 0x1e3   :  { %1206 = vmatprep.subr.bf16.mxu1 %v4571_v8 }
 0x1e9   :  { %3837 = vmatmul.mubr.msk.bf16.gmra.mxu1 %vm355_vm2, %v657_v52 }
 0x1ea   :  { %762 = vmatprep.mubr.bf16.mxu1 %v4917_v25 }
 0x1f1   :  { %3838 = vmatmul.mubr.msk.bf16.gmra.mxu1 %vm355_vm2, %v658_v53  ;;  %v4583_v53 = vld [vmem:[%s6309_s6 + $0xe4] ss:$8 sps:$4 sm:$0xff]  }
 0x299   :  { %v734_v2 = vpop.f32.mrf.mxu1 }
 0x29a   :  { %v771_v5 = vadd.f32 %v734_v2, %v5199_v61  ;;  %v4569_v61 = vld [vmem:[%s6309_s6 + $0x120] ss:$8 sps:$4 sm:$0xff]  }
 0x29b   :  { %v736_v10 = vpop.f32.mrf.mxu1  ;;  %1207 = vmatpush1.bf16.msra.mxu1 %v4569_v61 }
 0x29c   :  { %v772_v11 = vadd.f32 %v736_v10, %v5201_v0  ;;  %v797_v16 = vadd.f32 %v5261_v7, %v771_v5  ;;  %1208 = vmatprep.subr.bf16.mxu1 %v4574_v19 }
 0x29d   :  { %v738_v14 = vpop.f32.mrf.mxu1 }
 0x29e   :  { %v773_v17 = vadd.f32 %v738_v14, %v5203_v3  ;;  %v798_v0 = vadd.f32 %v5268_v13, %v772_v11  ;;  %v811_v29 = vmax.f32 %v797_v16, 0.0 }
 0x29f   :  { %v740_v20 = vpop.f32.mrf.mxu1  ;;  %1209 = vmatpush1.bf16.msra.mxu1 %v4572_v27 }
 0x2a0   :  { %v799_v22 = vadd.f32 %v5261_v7, %v773_v17  ;;  %v774_v23 = vadd.f32 %v740_v20, %v5205_v6  ;;  %v812_v36 = vmax.f32 %v798_v0, 0.0  ;;  %1210 = vmatprep.subr.bf16.mxu1 %v4577_v33  ;;  %v4517_v33 = vld [vmem:[%s6309_s6 + $0x70] ss:$8 sps:$4 sm:$0xff]  }
 0x2a1   :  { %v744_v26 = vpop.f32.mrf.mxu1 }
 0x2a2   :  { %v813_v3 = vmax.f32 %v799_v22, 0.0  ;;  %v800_v30 = vadd.f32 %v5268_v13, %v774_v23  ;;  %v775_v32 = vadd.f32 %v744_v26, %v5207_v9 }
 0x2a3   :  { %v746_v35 = vpop.f32.mrf.mxu1  ;;  %1211 = vmatpush1.bf16.msra.mxu1 %v4575_v41  ;;  %v4529_v41 = vld [vmem:[%s6309_s6 + $0x44] ss:$8 sps:$4 sm:$0xff]  }
 0x2a4   :  { %v5289_v6 = vpack.c.bf16 %v813_v3, %v811_v29  ;;  %v814_v38 = vmax.f32 %v800_v30, 0.0  ;;  %v776_v39 = vadd.f32 %v746_v35, %v5209_v12  ;;  %v801_v9 = vadd.f32 %v5261_v7, %v775_v32  ;;  %1212 = vmatprep.subr.bf16.mxu1 %v4580_v44  ;;  %v4516_v32 = vld [vmem:[%s6308_s5 + $0x10] sm:$0xff]   ;;  %v4522_v35 = vld [vmem:[%s6309_s6 + $0x64] ss:$8 sps:$4 sm:$0xff]  }
 0x2a5   :  { %v748_v40 = vpop.f32.mrf.mxu1  ;;  %v4530_v44 = vld [vmem:[%s6309_s6 + $0x30] ss:$8 sps:$4 sm:$0xff]  }
 0x2a6   :  { %v777_v42 = vadd.f32 %v748_v40, %v5211_v15  ;;  %v5297_v43 = vpack.c.bf16 %v814_v38, %v812_v36  ;;  %v802_v12 = vadd.f32 %v5268_v13, %v776_v39  ;;  %v4578_v15 = vld [vmem:[%s6309_s6 + $0xf0] ss:$8 sps:$4 sm:$0xff]   ;;  %v815_v49 = vmax.f32 %v801_v9, 0.0  ;;  %v4520_v36 = vld [vmem:[%s6309_s6 + $0x60] ss:$8 sps:$4 sm:$0xff]  }
 0x2a7   :  { %v750_v45 = vpop.f32.mrf.mxu1  ;;  %1213 = vmatpush1.bf16.msra.mxu1 %v4578_v15  ;;  %v4526_v38 = vld [vmem:[%s6309_s6 + $0x54] ss:$8 sps:$4 sm:$0xff]   ;;  %v4524_v40 = vld [vmem:[%s6309_s6 + $0x50] ss:$8 sps:$4 sm:$0xff]   ;;  %v4527_v9 = vld [vmem:[%s6309_s6 + $0x40] ss:$8 sps:$4 sm:$0xff]  }
 0x2a8   :  { %v803_v46 = vadd.f32 %v5261_v7, %v777_v42  ;;  %v778_v47 = vadd.f32 %v750_v45, %v5213_v18  ;;  %v816_v55 = vmax.f32 %v802_v12, 0.0  ;;  %1214 = vmatprep.subr.bf16.mxu1 %v4583_v53  ;;  %v4523_v39 = vld [vmem:[%s6308_s5 + $0x18] sm:$0x3f]   ;;  %v4535_v45 = vld [vmem:[%s6309_s6 + $0x24] ss:$8 sps:$4 sm:$0xff]  }
 0x2a9   :  { %v754_v48 = vpop.f32.mrf.mxu1  ;;  %v4532_v42 = vld [vmem:[%s6309_s6 + $0x34] ss:$8 sps:$4 sm:$0xff]   ;;  %v4533_v12 = vld [vmem:[%s6309_s6 + $0x20] ss:$8 sps:$4 sm:$0xff]  }
 0x2aa   :  { %v817_v50 = vmax.f32 %v803_v46, 0.0  ;;  %v804_v51 = vadd.f32 %v5268_v13, %v778_v47  ;;  %v779_v52 = vadd.f32 %v754_v48, %v5215_v21  ;;  %v4538_v46 = vld [vmem:[%s6309_s6 + $0x14] ss:$8 sps:$4 sm:$0xff]   ;;  %v4536_v47 = vld [vmem:[%s6309_s6 + $0x10] ss:$8 sps:$4 sm:$0xff]  }
 0x2ab   :  { %v756_v54 = vpop.f32.mrf.mxu1  ;;  %1215 = vmatpush1.bf16.msra.mxu1 %v4581_v59  ;;  %v4541_v48 = vld [vmem:[%s6309_s6 + $0x4] ss:$8 sps:$4 sm:$0xff]   ;;  %v4539_v15 = vld [vmem:[%s6309_s6] ss:$8 sps:$4 sm:$0xff]   ;;  %v4550_v53 = vld [vmem:[%s6309_s6 + $0xb4] ss:$8 sps:$4 sm:$0xff]  }
 0x2ac   :  { %v5313_v18 = vpack.c.bf16 %v817_v50, %v815_v49  ;;  %v818_v56 = vmax.f32 %v804_v51, 0.0  ;;  %v780_v57 = vadd.f32 %v756_v54, %v5217_v24  ;;  %v805_v21 = vadd.f32 %v5261_v7, %v779_v52  ;;  %v4544_v49 = vld [vmem:[%s6309_s6 + $0xd4] ss:$8 sps:$4 sm:$0xff]   ;;  %v4542_v50 = vld [vmem:[%s6309_s6 + $0xd0] ss:$8 sps:$4 sm:$0xff]  }
 0x2ad   :  { %v758_v58 = vpop.f32.mrf.mxu1  ;;  %v4547_v51 = vld [vmem:[%s6309_s6 + $0xc4] ss:$8 sps:$4 sm:$0xff]   ;;  %v4545_v52 = vld [vmem:[%s6309_s6 + $0xc0] ss:$8 sps:$4 sm:$0xff]   ;;  %v4548_v54 = vld [vmem:[%s6309_s6 + $0xb0] ss:$8 sps:$4 sm:$0xff]  }
 0x2ae   :  { %v781_v62 = vadd.f32 %v758_v58, %v5219_v28  ;;  %v5321_v63 = vpack.c.bf16 %v818_v56, %v816_v55  ;;  %v806_v2 = vadd.f32 %v5268_v13, %v780_v57  ;;  %v819_v10 = vmax.f32 %v805_v21, 0.0  ;;  %v4553_v55 = vld [vmem:[%s6309_s6 + $0xa4] ss:$8 sps:$4 sm:$0xff]   ;;  %v4551_v56 = vld [vmem:[%s6309_s6 + $0xa0] ss:$8 sps:$4 sm:$0xff]  }
 0x2af   :  { %v760_v4 = vpop.f32.mrf.mxu1  ;;  %v4556_v57 = vld [vmem:[%s6309_s6 + $0x94] ss:$8 sps:$4 sm:$0xff]   ;;  %v4554_v58 = vld [vmem:[%s6309_s6 + $0x90] ss:$8 sps:$4 sm:$0xff]   ;;  %v4559_v59 = vld [vmem:[%s6309_s6 + $0x84] ss:$8 sps:$4 sm:$0xff]  }
 0x2b0   :  { %v807_v5 = vadd.f32 %v5261_v7, %v781_v62  ;;  %v782_v24 = vadd.f32 %v760_v4, %v5221_v31  ;;  %v820_v16 = vmax.f32 %v806_v2, 0.0  ;;  %v4586_v21 = vld [vmem:[%s6309_s6 + $0x1b4] ss:$8 sps:$4 sm:$0xff]   ;;  %v4557_v62 = vld [vmem:[%s6309_s6 + $0x80] ss:$8 sps:$4 sm:$0xff]  }
 0x2b1   :  { %v764_v8 = vpop.f32.mrf.mxu1  ;;  %v4584_v2 = vld [vmem:[%s6309_s6 + $0x1b0] ss:$8 sps:$4 sm:$0xff]   ;;  %1220 = vmatprep.subr.bf16.mxu1 %v4586_v21  ;;  %v4589_v4 = vld [vmem:[%s6309_s6 + $0x1a4] ss:$8 sps:$4 sm:$0xff]  }
 0x2b2   :  { %v821_v11 = vmax.f32 %v807_v5, 0.0  ;;  %v808_v14 = vadd.f32 %v5268_v13, %v782_v24  ;;  %v783_v61 = vadd.f32 %v764_v8, %v5223_v34  ;;  %1221 = vmatpush2.bf16.msra.mxu1 %v4584_v2  ;;  %v4587_v5 = vld [vmem:[%s6309_s6 + $0x1a0] ss:$8 sps:$4 sm:$0xff]   ;;  %v4592_v24 = vld [vmem:[%s6309_s6 + $0x194] ss:$8 sps:$4 sm:$0xff]  }
 0x2b3   :  { %v766_v28 = vpop.f32.mrf.mxu1  ;;  %1222 = vmatprep.subr.bf16.mxu1 %v4589_v4  ;;  %v4590_v8 = vld [vmem:[%s6309_s6 + $0x190] ss:$8 sps:$4 sm:$0xff]   ;;  %v4639_v21 = vld [vmem:[%s6309_s6 + $0x264] ss:$8 sps:$4 sm:$0xff]   ;;  %v4642_v2 = vld [vmem:[%s6309_s6 + $0x254] ss:$8 sps:$4 sm:$0xff]  }
 0x2b4   :  { %v5328_v17 = vpack.c.bf16 %v821_v11, %v819_v10  ;;  %v822_v19 = vmax.f32 %v808_v14, 0.0  ;;  %v809_v20 = vadd.f32 %v5261_v7, %v783_v61  ;;  %v784_v0 = vadd.f32 %v766_v28, %v5225_v37  ;;  %v4514_v37 = vld [vmem:[%s6308_s5] sm:$0xff]   ;;  %v4515_v7 = vld [vmem:[%s6308_s5 + $0x8] sm:$0x3f]   ;;  %v4598_v14 = vld [vmem:[%s6309_s6 + $0x174] ss:$8 sps:$4 sm:$0xff]  }
 0x2b5   :  { %v768_v22 = vpop.f32.mrf.mxu1  ;;  %v4595_v10 = vld [vmem:[%s6309_s6 + $0x184] ss:$8 sps:$4 sm:$0xff]   ;;  %v4593_v11 = vld [vmem:[%s6309_s6 + $0x180] ss:$8 sps:$4 sm:$0xff]   ;;  %v4596_v61 = vld [vmem:[%s6309_s6 + $0x170] ss:$8 sps:$4 sm:$0xff]  }
 0x2b6   :  { %v823_v23 = vmax.f32 %v809_v20, 0.0  ;;  %v810_v31 = vadd.f32 %v5268_v13, %v784_v0  ;;  %v5333_v26 = vpack.c.bf16 %v822_v19, %v820_v16  ;;  %v4519_v13 = vld [vmem:[%s6309_s6 + $0x74] ss:$8 sps:$4 sm:$0xff]   ;;  %1223 = vmatpush2.bf16.msra.mxu1 %v4587_v5  ;;  %v4601_v16 = vld [vmem:[%s6309_s6 + $0x164] ss:$8 sps:$4 sm:$0xff]  }
 0x2b7   :  { %v769_v27 = vpop.f32.mrf.mxu1  ;;  %1224 = vmatprep.subr.bf16.mxu1 %v4592_v24  ;;  %v4599_v28 = vld [vmem:[%s6309_s6 + $0x160] ss:$8 sps:$4 sm:$0xff]   ;;  %v4606_v19 = vld [vmem:[%s6309_s6 + $0x234] ss:$8 sps:$4 sm:$0xff]   ;;  %v4640_v4 = vld [vmem:[%s6309_s6 + $0x250] ss:$8 sps:$4 sm:$0xff]  }
 0x2b8   :  { %v831_v29 = vpack.c.bf16 %v823_v23, %v823_v23  ;;  %v824_v3 = vmax.f32 %v810_v31, 0.0  ;;  %v4645_v5 = vld [vmem:[%s6309_s6 + $0x244] ss:$8 sps:$4 sm:$0xff]   ;;  %v4643_v24 = vld [vmem:[%s6309_s6 + $0x240] ss:$8 sps:$4 sm:$0xff]  }
 0x2ba   :  { %v5335_v34 = vpack.c.bf16 %v824_v3, %v824_v3  ;;  %v5340_v30 = vsel %vm854_vm3, %v831_v29, 0  ;;  %1225 = vmatpush2.bf16.msra.mxu1 %v4590_v8 }
 0x2bb   :  { %1226 = vmatprep.subr.bf16.mxu1 %v4595_v10 }
 0x2bc   :  { %3841 = vmatprep.subr.msk.bf16.mxu0 %vm854_vm3, %v5335_v34 }
 0x2bd   :  { %870 = vmatpush1.bf16.msra.mxu0 %v5340_v30 }
 0x2be   :  { %871 = vmatprep.subr.bf16.mxu0 %v5333_v26  ;;  %1227 = vmatpush2.bf16.msra.mxu1 %v4593_v11 }
 0x2bf   :  { %1228 = vmatprep.subr.bf16.mxu1 %v4598_v14 }
 0x2c1   :  { %872 = vmatpush1.bf16.msra.mxu0 %v5328_v17 }
 0x2c2   :  { %873 = vmatprep.subr.bf16.mxu0 %v5321_v63  ;;  %1229 = vmatpush2.bf16.msra.mxu1 %v4596_v61 }
 0x2c3   :  { %1230 = vmatprep.subr.bf16.mxu1 %v4601_v16 }
 0x2c5   :  { %874 = vmatpush1.bf16.msra.mxu0 %v5313_v18 }
 0x2c6   :  { %875 = vmatprep.subr.bf16.mxu0 %v5297_v43  ;;  %1231 = vmatpush2.bf16.msra.mxu1 %v4599_v28 }
 0x2c7   :  { %1705 = vmatprep.subr.bf16.mxu1 %v4606_v19 }
 0x2c9   :  { %876 = vmatpush1.bf16.msra.mxu0 %v5289_v6 }
 0x2ca   :  { %3850 = vmatprep.subr.msk.bf16.mxu0 %vm854_vm3, %v5335_v34 }
 0x2cc   :  { %3842 = vmatmul.mubr.msk.bf16.vlgmr.msra.gmra.mxu0 %vm847_vm4, %v4514_v37 }
 0x2cd   :  { %976 = vmatpush1.bf16.msra.mxu0 %v5340_v30  ;;  %903 = vmatprep.mubr.bf16.mxu0 %v4917_v25 }
 0x2ce   :  { %977 = vmatprep.subr.bf16.mxu0 %v5333_v26 }
 0x2d1   :  { %978 = vmatpush1.bf16.msra.mxu0 %v5328_v17 }
 0x2d2   :  { %979 = vmatprep.subr.bf16.mxu0 %v5321_v63 }
 0x2d4   :  { %3843 = vmatmul.mubr.msk.bf16.gmra.mxu0 %vm847_vm4, %v4515_v7 }
 0x2d5   :  { %980 = vmatpush1.bf16.msra.mxu0 %v5313_v18  ;;  %999 = vmatprep.mubr.bf16.mxu0 %v4917_v25 }
 0x2d6   :  { %981 = vmatprep.subr.bf16.mxu0 %v5297_v43 }
 0x2d9   :  { %982 = vmatpush1.bf16.msra.mxu0 %v5289_v6 }
 0x2da   :  { %1399 = vmatprep.subr.bf16.mxu0 %v4519_v13 }
 0x2dc   :  { %3851 = vmatmul.mubr.msk.bf16.vlgmr.msra.gmra.mxu0 %vm847_vm4, %v4516_v32 }
 0x2dd   :  { %1400 = vmatpush1.bf16.msra.mxu0 %v4517_v33  ;;  %1009 = vmatprep.mubr.bf16.mxu0 %v4917_v25 }
 0x2de   :  { %1401 = vmatprep.subr.bf16.mxu0 %v4522_v35 }
 0x2e1   :  { %1402 = vmatpush1.bf16.msra.mxu0 %v4520_v36 }
 0x2e2   :  { %1403 = vmatprep.subr.bf16.mxu0 %v4526_v38 }
 0x2e4   :  { %3852 = vmatmul.mubr.msk.bf16.gmra.mxu0 %vm847_vm4, %v4523_v39 }
 0x2e5   :  { %1404 = vmatpush1.bf16.msra.mxu0 %v4524_v40  ;;  %v4612_v40 = vld [vmem:[%s6309_s6 + $0x214] ss:$8 sps:$4 sm:$0xff]  }
 0x2e6   :  { %1405 = vmatprep.subr.bf16.mxu0 %v4529_v41 }
 0x2e9   :  { %1406 = vmatpush1.bf16.msra.mxu0 %v4527_v9 }
 0x2ea   :  { %1407 = vmatprep.subr.bf16.mxu0 %v4532_v42  ;;  %v4603_v42 = vld [vmem:[%s6308_s5 + $0x28] sm:$0x3f]  }
 0x2ed   :  { %1408 = vmatpush1.bf16.msra.mxu0 %v4530_v44 }
 0x2ee   :  { %1409 = vmatprep.subr.bf16.mxu0 %v4535_v45  ;;  %v4610_v45 = vld [vmem:[%s6309_s6 + $0x210] ss:$8 sps:$4 sm:$0xff]  }
 0x2f1   :  { %1410 = vmatpush1.bf16.msra.mxu0 %v4533_v12  ;;  %v4615_v12 = vld [vmem:[%s6309_s6 + $0x204] ss:$8 sps:$4 sm:$0xff]  }
 0x2f2   :  { %1411 = vmatprep.subr.bf16.mxu0 %v4538_v46  ;;  %v4613_v46 = vld [vmem:[%s6309_s6 + $0x200] ss:$8 sps:$4 sm:$0xff]  }
 0x2f5   :  { %1412 = vmatpush1.bf16.msra.mxu0 %v4536_v47  ;;  %v4618_v47 = vld [vmem:[%s6309_s6 + $0x1f4] ss:$8 sps:$4 sm:$0xff]  }
 0x2f6   :  { %1413 = vmatprep.subr.bf16.mxu0 %v4541_v48  ;;  %v4616_v48 = vld [vmem:[%s6309_s6 + $0x1f0] ss:$8 sps:$4 sm:$0xff]  }
 0x2f9   :  { %1414 = vmatpush1.bf16.msra.mxu0 %v4539_v15  ;;  %v4621_v15 = vld [vmem:[%s6309_s6 + $0x1e4] ss:$8 sps:$4 sm:$0xff]  }
 0x2fa   :  { %1419 = vmatprep.subr.bf16.mxu0 %v4544_v49  ;;  %v4619_v49 = vld [vmem:[%s6309_s6 + $0x1e0] ss:$8 sps:$4 sm:$0xff]  }
 0x2fd   :  { %1420 = vmatpush2.bf16.msra.mxu0 %v4542_v50  ;;  %v4624_v50 = vld [vmem:[%s6309_s6 + $0x1d4] ss:$8 sps:$4 sm:$0xff]  }
 0x2fe   :  { %1421 = vmatprep.subr.bf16.mxu0 %v4547_v51  ;;  %v4622_v51 = vld [vmem:[%s6309_s6 + $0x1d0] ss:$8 sps:$4 sm:$0xff]  }
 0x301   :  { %1422 = vmatpush2.bf16.msra.mxu0 %v4545_v52  ;;  %v4627_v52 = vld [vmem:[%s6309_s6 + $0x1c4] ss:$8 sps:$4 sm:$0xff]  }
 0x302   :  { %1423 = vmatprep.subr.bf16.mxu0 %v4550_v53  ;;  %v4625_v53 = vld [vmem:[%s6309_s6 + $0x1c0] ss:$8 sps:$4 sm:$0xff]  }
 0x305   :  { %1424 = vmatpush2.bf16.msra.mxu0 %v4548_v54  ;;  %v4630_v54 = vld [vmem:[%s6309_s6 + $0x294] ss:$8 sps:$4 sm:$0xff]  }
 0x306   :  { %1425 = vmatprep.subr.bf16.mxu0 %v4553_v55  ;;  %v4628_v55 = vld [vmem:[%s6309_s6 + $0x290] ss:$8 sps:$4 sm:$0xff]  }
 0x309   :  { %1426 = vmatpush2.bf16.msra.mxu0 %v4551_v56  ;;  %v4633_v56 = vld [vmem:[%s6309_s6 + $0x284] ss:$8 sps:$4 sm:$0xff]  }
 0x30a   :  { %1427 = vmatprep.subr.bf16.mxu0 %v4556_v57  ;;  %v4631_v57 = vld [vmem:[%s6309_s6 + $0x280] ss:$8 sps:$4 sm:$0xff]  }
 0x30d   :  { %1428 = vmatpush2.bf16.msra.mxu0 %v4554_v58  ;;  %v4636_v58 = vld [vmem:[%s6309_s6 + $0x274] ss:$8 sps:$4 sm:$0xff]  }
 0x30e   :  { %1429 = vmatprep.subr.bf16.mxu0 %v4559_v59  ;;  %v4634_v59 = vld [vmem:[%s6309_s6 + $0x270] ss:$8 sps:$4 sm:$0xff]  }
 0x311   :  { %1430 = vmatpush2.bf16.msra.mxu0 %v4557_v62  ;;  %v4637_v62 = vld [vmem:[%s6309_s6 + $0x260] ss:$8 sps:$4 sm:$0xff]  }
 0x312   :  { %3947 = vmatprep.subr.msk.bf16.mxu0 %vm854_vm3, %v5335_v34 }
 0x38c   :  { %v895_v20 = vpop.f32.mrf.mxu0 }
 0x38e   :  { %v897_v0 = vpop.f32.mrf.mxu0 }
 0x390   :  { %v899_v22 = vpop.f32.mrf.mxu0 }
 0x391   :  { %v914_v27 = vpack.c.bf16 %v899_v22, %v895_v20 }
 0x392   :  { %v901_v23 = vpop.f32.mrf.mxu0 }
 0x393   :  { %v915_v31 = vpack.c.bf16 %v901_v23, %v897_v0 }
 0x394   :  { %v905_v29 = vpop.f32.mrf.mxu0 }
 0x395   :  { %3939 = vmatprep.mubr.msk.bf16.mxu0 %vm1193_vm5, %v915_v31 }
 0x396   :  { %v907_v3 = vpop.f32.mrf.mxu0  ;;  %1432 = vmatmul.mubr.bf16.vlgmr.msra.gmra.mxu0 %v914_v27 }
 0x397   :  { %1482 = vmatpush1.bf16.msra.mxu0 %v5340_v30 }
 0x398   :  { %1483 = vmatprep.subr.bf16.mxu0 %v5333_v26  ;;  %v909_v34 = vpop.f32.mrf.mxu0 }
 0x399   :  { %v916_v13 = vpack.c.bf16 %v909_v34, %v905_v29 }
 0x39a   :  { %v911_v37 = vpop.f32.mrf.mxu0 }
 0x39b   :  { %v917_v7 = vpack.c.bf16 %v911_v37, %v907_v3  ;;  %1484 = vmatpush1.bf16.msra.mxu0 %v5328_v17  ;;  %v4602_v17 = vld [vmem:[%s6308_s5 + $0x20] sm:$0xff]  }
 0x39c   :  { %1485 = vmatprep.subr.bf16.mxu0 %v5321_v63  ;;  %v1001_v32 = vpop.f32.mrf.mxu0  ;;  %v4604_v63 = vld [vmem:[%s6309_s6 + $0x230] ss:$8 sps:$4 sm:$0xff]  }
 0x39d   :  { %3940 = vmatprep.mubr.msk.bf16.mxu0 %vm1193_vm5, %v917_v7 }
 0x39e   :  { %v1003_v33 = vpop.f32.mrf.mxu0  ;;  %1442 = vmatmul.mubr.bf16.gmra.mxu0 %v916_v13 }
 0x39f   :  { %1486 = vmatpush1.bf16.msra.mxu0 %v5313_v18  ;;  %1505 = vmatprep.mubr.bf16.mxu0 %v4917_v25  ;;  %v4609_v18 = vld [vmem:[%s6309_s6 + $0x224] ss:$8 sps:$4 sm:$0xff]  }
 0x3a0   :  { %1487 = vmatprep.subr.bf16.mxu0 %v5297_v43  ;;  %v1005_v26 = vpop.f32.mrf.mxu0 }
 0x3a1   :  { %v1020_v30 = vpack.c.bf16 %v1005_v26, %v1001_v32  ;;  %v4690_v32 = vld [vmem:[%s6312_s9 + $0x70] ss:$8 sps:$4 sm:$0xff]   ;;  %v4695_v26 = vld [vmem:[%s6312_s9 + $0x64] ss:$8 sps:$4 sm:$0xff]  }
 0x3a2   :  { %v1007_v35 = vpop.f32.mrf.mxu0 }
 0x3a3   :  { %v1021_v36 = vpack.c.bf16 %v1007_v35, %v1003_v33  ;;  %1488 = vmatpush1.bf16.msra.mxu0 %v5289_v6  ;;  %v4607_v6 = vld [vmem:[%s6309_s6 + $0x220] ss:$8 sps:$4 sm:$0xff]   ;;  %v4692_v33 = vld [vmem:[%s6312_s9 + $0x74] ss:$8 sps:$4 sm:$0xff]  }
 0x3a4   :  { %v1011_v38 = vpop.f32.mrf.mxu0  ;;  %v4698_v35 = vld [vmem:[%s6312_s9 + $0x54] ss:$8 sps:$4 sm:$0xff]  }
 0x3a5   :  { %3909 = vmatprep.mubr.msk.bf16.mxu1 %vm1193_vm5, %v1021_v36  ;;  %v4696_v36 = vld [vmem:[%s6312_s9 + $0x50] ss:$8 sps:$4 sm:$0xff]  }
 0x3a6   :  { %v1013_v43 = vpop.f32.mrf.mxu0  ;;  %1233 = vmatmul.mubr.bf16.vlgmr.msra.gmra.mxu1 %v1020_v30  ;;  %3948 = vmatmul.mubr.msk.bf16.vlgmr.msra.gmra.mxu0 %vm847_vm4, %v4602_v17  ;;  %v4693_v30 = vld [vmem:[%s6312_s9 + $0x60] ss:$8 sps:$4 sm:$0xff]  }
 0x3a7   :  { %1515 = vmatprep.mubr.bf16.mxu0 %v4917_v25  ;;  %1706 = vmatpush1.bf16.msra.mxu1 %v4604_v63  ;;  %v4701_v63 = vld [vmem:[%s6312_s9 + $0x44] ss:$8 sps:$4 sm:$0xff]  }
 0x3a8   :  { %v1015_v39 = vpop.f32.mrf.mxu0  ;;  %1707 = vmatprep.subr.bf16.mxu1 %v4609_v18  ;;  %v4699_v18 = vld [vmem:[%s6312_s9 + $0x40] ss:$8 sps:$4 sm:$0xff]  }
 0x3a9   :  { %v1022_v41 = vpack.c.bf16 %v1015_v39, %v1011_v38  ;;  %v4702_v39 = vld [vmem:[%s6312_s9 + $0x30] ss:$8 sps:$4 sm:$0xff]  }
 0x3aa   :  { %v1017_v9 = vpop.f32.mrf.mxu0 }
 0x3ab   :  { %v1023_v44 = vpack.c.bf16 %v1017_v9, %v1013_v43  ;;  %1708 = vmatpush1.bf16.msra.mxu1 %v4607_v6  ;;  %v4704_v43 = vld [vmem:[%s6312_s9 + $0x34] ss:$8 sps:$4 sm:$0xff]   ;;  %v4705_v9 = vld [vmem:[%s6312_s9 + $0x20] ss:$8 sps:$4 sm:$0xff]  }
 0x3ac   :  { %1709 = vmatprep.subr.bf16.mxu1 %v4612_v40  ;;  %v4707_v40 = vld [vmem:[%s6312_s9 + $0x24] ss:$8 sps:$4 sm:$0xff]  }
 0x3ad   :  { %3910 = vmatprep.mubr.msk.bf16.mxu1 %vm1193_vm5, %v1023_v44 }
 0x3ae   :  { %1243 = vmatmul.mubr.bf16.gmra.mxu1 %v1022_v41  ;;  %3949 = vmatmul.mubr.msk.bf16.gmra.mxu0 %vm847_vm4, %v4603_v42  ;;  %v4710_v42 = vld [vmem:[%s6312_s9 + $0x14] ss:$8 sps:$4 sm:$0xff]  }
 0x3af   :  { %1710 = vmatpush1.bf16.msra.mxu1 %v4610_v45  ;;  %1846 = vmatprep.mubr.bf16.mxu0 %v4917_v25  ;;  %v4708_v45 = vld [vmem:[%s6312_s9 + $0x10] ss:$8 sps:$4 sm:$0xff]  }
 0x3b0   :  { %1711 = vmatprep.subr.bf16.mxu1 %v4615_v12  ;;  %v4713_v12 = vld [vmem:[%s6312_s9 + $0x4] ss:$8 sps:$4 sm:$0xff]  }
 0x3b3   :  { %1712 = vmatpush1.bf16.msra.mxu1 %v4613_v46 }
 0x3b4   :  { %1713 = vmatprep.subr.bf16.mxu1 %v4618_v47  ;;  %v4711_v47 = vld [vmem:[%s6312_s9] ss:$8 sps:$4 sm:$0xff]  }
 0x3b7   :  { %1714 = vmatpush1.bf16.msra.mxu1 %v4616_v48  ;;  %v4716_v48 = vld [vmem:[%s6312_s9 + $0xd4] ss:$8 sps:$4 sm:$0xff]  }
 0x3b8   :  { %1715 = vmatprep.subr.bf16.mxu1 %v4621_v15 }
 0x3bb   :  { %1716 = vmatpush1.bf16.msra.mxu1 %v4619_v49  ;;  %v4714_v49 = vld [vmem:[%s6312_s9 + $0xd0] ss:$8 sps:$4 sm:$0xff]  }
 0x3bc   :  { %1717 = vmatprep.subr.bf16.mxu1 %v4624_v50  ;;  %v4719_v50 = vld [vmem:[%s6312_s9 + $0xc4] ss:$8 sps:$4 sm:$0xff]  }
 0x3bf   :  { %1718 = vmatpush1.bf16.msra.mxu1 %v4622_v51 }
 0x3c0   :  { %1719 = vmatprep.subr.bf16.mxu1 %v4627_v52  ;;  %v1766_v52 = vld [vmem:[%s6313_s7] sm:$0x3] }
 0x3c3   :  { %1720 = vmatpush1.bf16.msra.mxu1 %v4625_v53 }
 0x3c4   :  { %1725 = vmatprep.subr.bf16.mxu1 %v4630_v54 }
 0x3c7   :  { %1726 = vmatpush2.bf16.msra.mxu1 %v4628_v55  ;;  %v4717_v55 = vld [vmem:[%s6312_s9 + $0xc0] ss:$8 sps:$4 sm:$0xff]  }
 0x3c8   :  { %1727 = vmatprep.subr.bf16.mxu1 %v4633_v56 }
 0x3cb   :  { %1728 = vmatpush2.bf16.msra.mxu1 %v4631_v57 }
 0x3cc   :  { %1729 = vmatprep.subr.bf16.mxu1 %v4636_v58  ;;  %v1771_v58 = vrot.slane %v1766_v52, %v5246_v60 }
 0x3cf   :  { %1730 = vmatpush2.bf16.msra.mxu1 %v4634_v59  ;;  %v4722_v59 = vld [vmem:[%s6312_s9 + $0xb4] ss:$8 sps:$4 sm:$0xff]  }
 0x3d0   :  { %1731 = vmatprep.subr.bf16.mxu1 %v4639_v21 }
 0x3d3   :  { %1732 = vmatpush2.bf16.msra.mxu1 %v4637_v62 }
 0x3d4   :  { %1733 = vmatprep.subr.bf16.mxu1 %v4642_v2 }
 0x3d7   :  { %1734 = vmatpush2.bf16.msra.mxu1 %v4640_v4  ;;  %v1775_v4 = vrot.slane %v1766_v52, %v5254_v1  ;;  %v4659_v52 = vld [vmem:[%s6312_s9 + $0x124] ss:$8 sps:$4 sm:$0xff]  }
 0x3d8   :  { %1735 = vmatprep.subr.bf16.mxu1 %v4645_v5 }
 0x3db   :  { %1736 = vmatpush2.bf16.msra.mxu1 %v4643_v24  ;;  %v4720_v24 = vld [vmem:[%s6312_s9 + $0xb0] ss:$8 sps:$4 sm:$0xff]  }
 0x3dc   :  { %2301 = vmatprep.subr.bf16.mxu1 %v4692_v33 }
 0x456   :  { %v5605_v8 = vpop.f32.mrf.mxu0 }
 0x458   :  { %v5607_v10 = vpop.f32.mrf.mxu0 }
 0x45a   :  { %v5609_v11 = vpop.f32.mrf.mxu0 }
 0x45c   :  { %v5611_v14 = vpop.f32.mrf.mxu0 }
 0x45e   :  { %v5613_v61 = vpop.f32.mrf.mxu0 }
 0x460   :  { %v5615_v16 = vpop.f32.mrf.mxu0 }
 0x462   :  { %v5617_v28 = vpop.f32.mrf.mxu0 }
 0x464   :  { %v5619_v19 = vpop.f32.mrf.mxu0 }
 0x466   :  { %v1507_v20 = vpop.f32.mrf.mxu0  ;;  %v1234_v17 = vpop.f32.mrf.mxu1 }
 0x467   :  { %v1434_v53 = vadd.f32 %v5605_v8, %v1234_v17 }
 0x468   :  { %v1509_v0 = vpop.f32.mrf.mxu0  ;;  %v1236_v38 = vpop.f32.mrf.mxu1 }
 0x469   :  { %v1436_v56 = vadd.f32 %v5607_v10, %v1236_v38 }
 0x46a   :  { %v1511_v22 = vpop.f32.mrf.mxu0  ;;  %v1238_v6 = vpop.f32.mrf.mxu1 }
 0x46b   :  { %v1526_v27 = vpack.c.bf16 %v1511_v22, %v1507_v20  ;;  %v1438_v62 = vadd.f32 %v5609_v11, %v1238_v6 }
 0x46c   :  { %v1513_v23 = vpop.f32.mrf.mxu0  ;;  %v1240_v41 = vpop.f32.mrf.mxu1 }
 0x46d   :  { %v1527_v31 = vpack.c.bf16 %v1513_v23, %v1509_v0  ;;  %v1440_v8 = vadd.f32 %v5611_v14, %v1240_v41  ;;  %v4725_v0 = vld [vmem:[%s6312_s9 + $0xa4] ss:$8 sps:$4 sm:$0xff]   ;;  %v4723_v14 = vld [vmem:[%s6312_s9 + $0xa0] ss:$8 sps:$4 sm:$0xff]  }
 0x46e   :  { %v1517_v29 = vpop.f32.mrf.mxu0  ;;  %v1244_v44 = vpop.f32.mrf.mxu1 }
 0x46f   :  { %4006 = vmatprep.mubr.msk.bf16.mxu1 %vm1193_vm5, %v1527_v31  ;;  %v1444_v11 = vadd.f32 %v5613_v61, %v1244_v44 }
 0x470   :  { %v1519_v3 = vpop.f32.mrf.mxu0  ;;  %1738 = vmatmul.mubr.bf16.vlgmr.msra.gmra.mxu1 %v1526_v27  ;;  %v1246_v46 = vpop.f32.mrf.mxu1 }
 0x471   :  { %2302 = vmatpush1.bf16.msra.mxu1 %v4690_v32 }
 0x472   :  { %v1521_v34 = vpop.f32.mrf.mxu0  ;;  %2303 = vmatprep.subr.bf16.mxu1 %v4695_v26  ;;  %v1248_v15 = vpop.f32.mrf.mxu1 }
 0x473   :  { %v1528_v13 = vpack.c.bf16 %v1521_v34, %v1517_v29  ;;  %v1446_v29 = vadd.f32 %v5615_v16, %v1246_v46  ;;  %v1448_v32 = vadd.f32 %v5617_v28, %v1248_v15  ;;  %v4650_v46 = vld [vmem:[%s6312_s9 + $0x154] ss:$8 sps:$4 sm:$0xff]   ;;  %v4653_v15 = vld [vmem:[%s6312_s9 + $0x144] ss:$8 sps:$4 sm:$0xff]  }
 0x474   :  { %v1523_v37 = vpop.f32.mrf.mxu0  ;;  %v1250_v51 = vpop.f32.mrf.mxu1 }
 0x475   :  { %v1529_v7 = vpack.c.bf16 %v1523_v37, %v1519_v3  ;;  %2304 = vmatpush1.bf16.msra.mxu1 %v4693_v30  ;;  %v1450_v17 = vadd.f32 %v5619_v19, %v1250_v51  ;;  %v4654_v51 = vld [vmem:[%s6312_s9 + $0x130] ss:$8 sps:$4 sm:$0xff]  }
 0x476   :  { %2305 = vmatprep.subr.bf16.mxu1 %v4698_v35 }
 0x477   :  { %4007 = vmatprep.mubr.msk.bf16.mxu1 %vm1193_vm5, %v1529_v7 }
 0x478   :  { %1748 = vmatmul.mubr.bf16.gmra.mxu1 %v1528_v13 }
 0x479   :  { %2306 = vmatpush1.bf16.msra.mxu1 %v4696_v36 }
 0x47a   :  { %2307 = vmatprep.subr.bf16.mxu1 %v4701_v63 }
 0x47d   :  { %2308 = vmatpush1.bf16.msra.mxu1 %v4699_v18 }
 0x47e   :  { %2309 = vmatprep.subr.bf16.mxu1 %v4704_v43 }
 0x481   :  { %2310 = vmatpush1.bf16.msra.mxu1 %v4702_v39 }
 0x482   :  { %2311 = vmatprep.subr.bf16.mxu1 %v4707_v40 }
 0x485   :  { %2312 = vmatpush1.bf16.msra.mxu1 %v4705_v9 }
 0x486   :  { %2313 = vmatprep.subr.bf16.mxu1 %v4710_v42 }
 0x489   :  { %2314 = vmatpush1.bf16.msra.mxu1 %v4708_v45 }
 0x48a   :  { %2315 = vmatprep.subr.bf16.mxu1 %v4713_v12  ;;  %v4646_v12 = vld [vmem:[%s6311_s8] sm:$0x3f]  }
 0x48d   :  { %2316 = vmatpush1.bf16.msra.mxu1 %v4711_v47  ;;  %v4647_v47 = vld [vmem:[%s6311_s8 + $0x8] sm:$0x3f]  }
 0x48e   :  { %2321 = vmatprep.subr.bf16.mxu1 %v4716_v48  ;;  %v4648_v48 = vld [vmem:[%s6312_s9 + $0x150] ss:$8 sps:$4 sm:$0xff]  }
 0x491   :  { %2322 = vmatpush2.bf16.msra.mxu1 %v4714_v49  ;;  %v4651_v49 = vld [vmem:[%s6312_s9 + $0x140] ss:$8 sps:$4 sm:$0xff]  }
 0x492   :  { %2323 = vmatprep.subr.bf16.mxu1 %v4719_v50  ;;  %v4656_v50 = vld [vmem:[%s6312_s9 + $0x134] ss:$8 sps:$4 sm:$0xff]  }
 0x495   :  { %2324 = vmatpush2.bf16.msra.mxu1 %v4717_v55  ;;  %v4660_v55 = vld [vmem:[%s6312_s9 + $0x110] ss:$8 sps:$4 sm:$0xff]  }
 0x496   :  { %2325 = vmatprep.subr.bf16.mxu1 %v4722_v59  ;;  %v4666_v59 = vld [vmem:[%s6312_s9 + $0xf0] ss:$8 sps:$4 sm:$0xff]  }
 0x499   :  { %2326 = vmatpush2.bf16.msra.mxu1 %v4720_v24  ;;  %v4675_v24 = vld [vmem:[%s6312_s9 + $0x1a0] ss:$8 sps:$4 sm:$0xff]  }
 0x49a   :  { %2327 = vmatprep.subr.bf16.mxu1 %v4725_v0  ;;  %v4681_v0 = vld [vmem:[%s6312_s9 + $0x180] ss:$8 sps:$4 sm:$0xff]  }
 0x49d   :  { %2328 = vmatpush2.bf16.msra.mxu1 %v4723_v14  ;;  %v4729_v14 = vld [vmem:[%s6312_s9 + $0x80] ss:$8 sps:$4 sm:$0xff]  }
 0x530   :  { %v1739_v54 = vpop.f32.mrf.mxu1 }
 0x531   :  { %v1758_v57 = vadd.f32 %v1739_v54, %v1434_v53  ;;  %v4657_v53 = vld [vmem:[%s6312_s9 + $0x120] ss:$8 sps:$4 sm:$0xff]   ;;  %v4662_v54 = vld [vmem:[%s6312_s9 + $0x114] ss:$8 sps:$4 sm:$0xff]  }
 0x532   :  { %v1741_v21 = vpop.f32.mrf.mxu1 }
 0x533   :  { %v1759_v2 = vadd.f32 %v1741_v21, %v1436_v56  ;;  %v1778_v10 = vadd.f32 %v1771_v58, %v1758_v57  ;;  %v4665_v56 = vld [vmem:[%s6312_s9 + $0x104] ss:$8 sps:$4 sm:$0xff]   ;;  %v4663_v57 = vld [vmem:[%s6312_s9 + $0x100] ss:$8 sps:$4 sm:$0xff]  }
 0x534   :  { %v1743_v5 = vpop.f32.mrf.mxu1  ;;  %v4671_v21 = vld [vmem:[%s6312_s9 + $0xe4] ss:$8 sps:$4 sm:$0xff]  }
 0x535   :  { %v1760_v20 = vadd.f32 %v1743_v5, %v1438_v62  ;;  %v1779_v23 = vadd.f32 %v1775_v4, %v1759_v2  ;;  %v1786_v34 = vmax.f32 %v1778_v10, 0.0  ;;  %v4669_v62 = vld [vmem:[%s6312_s9 + $0xe0] ss:$8 sps:$4 sm:$0xff]   ;;  %v4674_v2 = vld [vmem:[%s6312_s9 + $0x1b4] ss:$8 sps:$4 sm:$0xff]  }
 0x536   :  { %v1745_v22 = vpop.f32.mrf.mxu1  ;;  %v4677_v5 = vld [vmem:[%s6312_s9 + $0x1a4] ss:$8 sps:$4 sm:$0xff]   ;;  %v4678_v10 = vld [vmem:[%s6312_s9 + $0x190] ss:$8 sps:$4 sm:$0xff]  }
 0x537   :  { %v1780_v31 = vadd.f32 %v1771_v58, %v1760_v20  ;;  %v1761_v27 = vadd.f32 %v1745_v22, %v1440_v8  ;;  %v1787_v61 = vmax.f32 %v1779_v23, 0.0  ;;  %v4680_v8 = vld [vmem:[%s6312_s9 + $0x194] ss:$8 sps:$4 sm:$0xff]   ;;  %v4683_v20 = vld [vmem:[%s6312_s9 + $0x184] ss:$8 sps:$4 sm:$0xff]  }
 0x538   :  { %v1749_v3 = vpop.f32.mrf.mxu1  ;;  %v4686_v22 = vld [vmem:[%s6312_s9 + $0x174] ss:$8 sps:$4 sm:$0xff]   ;;  %v4689_v23 = vld [vmem:[%s6312_s9 + $0x164] ss:$8 sps:$4 sm:$0xff]  }
 0x539   :  { %v1788_v37 = vmax.f32 %v1780_v31, 0.0  ;;  %v1781_v7 = vadd.f32 %v1775_v4, %v1761_v27  ;;  %v1762_v13 = vadd.f32 %v1749_v3, %v1444_v11  ;;  %v4684_v11 = vld [vmem:[%s6312_s9 + $0x170] ss:$8 sps:$4 sm:$0xff]   ;;  %v4687_v31 = vld [vmem:[%s6312_s9 + $0x160] ss:$8 sps:$4 sm:$0xff]  }
 0x53a   :  { %v1751_v33 = vpop.f32.mrf.mxu1  ;;  %v4728_v27 = vld [vmem:[%s6312_s9 + $0x94] ss:$8 sps:$4 sm:$0xff]   ;;  %v4731_v3 = vld [vmem:[%s6312_s9 + $0x84] ss:$8 sps:$4 sm:$0xff]  }
 0x53b   :  { %v5707_v26 = vpack.c.bf16 %v1788_v37, %v1786_v34  ;;  %v1789_v30 = vmax.f32 %v1781_v7, 0.0  ;;  %v1763_v35 = vadd.f32 %v1751_v33, %v1446_v29  ;;  %v1782_v36 = vadd.f32 %v1771_v58, %v1762_v13  ;;  %v4726_v29 = vld [vmem:[%s6312_s9 + $0x90] ss:$8 sps:$4 sm:$0xff]   ;;  %2329 = vmatprep.subr.bf16.mxu1 %v4728_v27  ;;  %v4822_v27 = vld [vmem:[%s6314_s12 + $0x44] ss:$8 sps:$4 sm:$0xff]  }
 0x53c   :  { %v1753_v16 = vpop.f32.mrf.mxu1  ;;  %2330 = vmatpush2.bf16.msra.mxu1 %v4726_v29  ;;  %v4820_v29 = vld [vmem:[%s6314_s12 + $0x40] ss:$8 sps:$4 sm:$0xff]  }
 0x53d   :  { %v1764_v63 = vadd.f32 %v1753_v16, %v1448_v32  ;;  %v5710_v38 = vpack.c.bf16 %v1789_v30, %v1787_v61  ;;  %v1783_v43 = vadd.f32 %v1775_v4, %v1763_v35  ;;  %v1790_v40 = vmax.f32 %v1782_v36, 0.0  ;;  %2331 = vmatprep.subr.bf16.mxu1 %v4731_v3  ;;  %v4825_v3 = vld [vmem:[%s6314_s12 + $0x34] ss:$8 sps:$4 sm:$0xff]  }
 0x53e   :  { %v1755_v18 = vpop.f32.mrf.mxu1 }
 0x53f   :  { %v1784_v6 = vadd.f32 %v1771_v58, %v1764_v63  ;;  %v1765_v39 = vadd.f32 %v1755_v18, %v1450_v17  ;;  %v1791_v9 = vmax.f32 %v1783_v43, 0.0  ;;  %v4668_v58 = vld [vmem:[%s6312_s9 + $0xf4] ss:$8 sps:$4 sm:$0xff]   ;;  %v4733_v43 = vld [vmem:[%s6312_s9 + $0x230] ss:$8 sps:$4 sm:$0xff]  }
 0x540   :  { %2332 = vmatpush2.bf16.msra.mxu1 %v4729_v14  ;;  %v4735_v63 = vld [vmem:[%s6312_s9 + $0x234] ss:$8 sps:$4 sm:$0xff]   ;;  %v4823_v14 = vld [vmem:[%s6314_s12 + $0x30] ss:$8 sps:$4 sm:$0xff]  }
 0x541   :  { %v1792_v28 = vmax.f32 %v1784_v6, 0.0  ;;  %v1785_v41 = vadd.f32 %v1775_v4, %v1765_v39  ;;  %v4672_v4 = vld [vmem:[%s6312_s9 + $0x1b0] ss:$8 sps:$4 sm:$0xff]   ;;  %v4738_v6 = vld [vmem:[%s6312_s9 + $0x224] ss:$8 sps:$4 sm:$0xff]  }
 0x542   :  { %v4732_v18 = vld [vmem:[%s6311_s8 + $0x10] sm:$0x3f]  }
 0x543   :  { %v1796_v42 = vpack.c.bf16 %v1792_v28, %v1790_v40  ;;  %v1793_v44 = vmax.f32 %v1785_v41, 0.0  ;;  %v4739_v39 = vld [vmem:[%s6312_s9 + $0x210] ss:$8 sps:$4 sm:$0xff]   ;;  %v4744_v40 = vld [vmem:[%s6312_s9 + $0x204] ss:$8 sps:$4 sm:$0xff]  }
 0x544   :  { %v4742_v28 = vld [vmem:[%s6312_s9 + $0x200] ss:$8 sps:$4 sm:$0xff]   ;;  %v4747_v41 = vld [vmem:[%s6312_s9 + $0x1f4] ss:$8 sps:$4 sm:$0xff]  }
 0x545   :  { %v5712_v45 = vpack.c.bf16 %v1793_v44, %v1791_v9  ;;  %v5717_v19 = vsel %vm368_vm1, %v1796_v42, 0  ;;  %v4745_v9 = vld [vmem:[%s6312_s9 + $0x1f0] ss:$8 sps:$4 sm:$0xff]   ;;  %v4750_v42 = vld [vmem:[%s6312_s9 + $0x1e4] ss:$8 sps:$4 sm:$0xff]  }
 0x546   :  { %v4748_v44 = vld [vmem:[%s6312_s9 + $0x1e0] ss:$8 sps:$4 sm:$0xff]  }
 0x547   :  { %4009 = vmatprep.subr.msk.bf16.mxu0 %vm368_vm1, %v5712_v45 }
 0x548   :  { %1827 = vmatpush1.bf16.msra.mxu0 %v5717_v19 }
 0x549   :  { %1828 = vmatprep.subr.bf16.mxu0 %v5710_v38 }
 0x54c   :  { %1829 = vmatpush1.bf16.msra.mxu0 %v5707_v26 }
 0x54d   :  { %4014 = vmatprep.subr.msk.bf16.mxu0 %vm368_vm1, %v5712_v45 }
 0x54f   :  { %4010 = vmatmul.mubr.msk.bf16.vlgmr.msra.gmra.mxu0 %vm355_vm2, %v4646_v12  ;;  %v4756_v12 = vld [vmem:[%s6312_s9 + $0x1c4] ss:$8 sps:$4 sm:$0xff]  }
 0x550   :  { %1911 = vmatpush1.bf16.msra.mxu0 %v5717_v19  ;;  %1930 = vmatprep.mubr.bf16.mxu0 %v4917_v25 }
 0x551   :  { %1912 = vmatprep.subr.bf16.mxu0 %v5710_v38 }
 0x554   :  { %1913 = vmatpush1.bf16.msra.mxu0 %v5707_v26 }
 0x555   :  { %2115 = vmatprep.subr.bf16.mxu0 %v4650_v46  ;;  %v4754_v46 = vld [vmem:[%s6312_s9 + $0x1c0] ss:$8 sps:$4 sm:$0xff]  }
 0x557   :  { %4015 = vmatmul.mubr.msk.bf16.vlgmr.msra.gmra.mxu0 %vm355_vm2, %v4647_v47  ;;  %v4759_v47 = vld [vmem:[%s6312_s9 + $0x294] ss:$8 sps:$4 sm:$0xff]  }
 0x558   :  { %2116 = vmatpush1.bf16.msra.mxu0 %v4648_v48  ;;  %v4757_v48 = vld [vmem:[%s6312_s9 + $0x290] ss:$8 sps:$4 sm:$0xff]  }
 0x559   :  { %2117 = vmatprep.subr.bf16.mxu0 %v4653_v15  ;;  %v4762_v15 = vld [vmem:[%s6312_s9 + $0x284] ss:$8 sps:$4 sm:$0xff]  }
 0x55c   :  { %2118 = vmatpush1.bf16.msra.mxu0 %v4651_v49  ;;  %v4760_v49 = vld [vmem:[%s6312_s9 + $0x280] ss:$8 sps:$4 sm:$0xff]  }
 0x55d   :  { %2119 = vmatprep.subr.bf16.mxu0 %v4656_v50  ;;  %v4765_v50 = vld [vmem:[%s6312_s9 + $0x274] ss:$8 sps:$4 sm:$0xff]  }
 0x560   :  { %2120 = vmatpush1.bf16.msra.mxu0 %v4654_v51  ;;  %v4763_v51 = vld [vmem:[%s6312_s9 + $0x270] ss:$8 sps:$4 sm:$0xff]  }
 0x561   :  { %2121 = vmatprep.subr.bf16.mxu0 %v4659_v52  ;;  %v4768_v52 = vld [vmem:[%s6312_s9 + $0x264] ss:$8 sps:$4 sm:$0xff]  }
 0x564   :  { %2122 = vmatpush1.bf16.msra.mxu0 %v4657_v53  ;;  %v4766_v53 = vld [vmem:[%s6312_s9 + $0x260] ss:$8 sps:$4 sm:$0xff]  }
 0x565   :  { %2123 = vmatprep.subr.bf16.mxu0 %v4662_v54  ;;  %v4771_v54 = vld [vmem:[%s6312_s9 + $0x254] ss:$8 sps:$4 sm:$0xff]  }
 0x568   :  { %2124 = vmatpush1.bf16.msra.mxu0 %v4660_v55  ;;  %v4769_v55 = vld [vmem:[%s6312_s9 + $0x250] ss:$8 sps:$4 sm:$0xff]  }
 0x569   :  { %2125 = vmatprep.subr.bf16.mxu0 %v4665_v56  ;;  %v4774_v56 = vld [vmem:[%s6312_s9 + $0x244] ss:$8 sps:$4 sm:$0xff]  }
 0x56c   :  { %2126 = vmatpush1.bf16.msra.mxu0 %v4663_v57  ;;  %v4772_v57 = vld [vmem:[%s6312_s9 + $0x240] ss:$8 sps:$4 sm:$0xff]  }
 0x56d   :  { %2127 = vmatprep.subr.bf16.mxu0 %v4668_v58 }
 0x570   :  { %2128 = vmatpush1.bf16.msra.mxu0 %v4666_v59 }
 0x571   :  { %2129 = vmatprep.subr.bf16.mxu0 %v4671_v21 }
 0x574   :  { %2130 = vmatpush1.bf16.msra.mxu0 %v4669_v62 }
 0x575   :  { %2135 = vmatprep.subr.bf16.mxu0 %v4674_v2 }
 0x578   :  { %2136 = vmatpush2.bf16.msra.mxu0 %v4672_v4 }
 0x579   :  { %2137 = vmatprep.subr.bf16.mxu0 %v4677_v5 }
 0x57c   :  { %2138 = vmatpush2.bf16.msra.mxu0 %v4675_v24 }
 0x57d   :  { %2139 = vmatprep.subr.bf16.mxu0 %v4680_v8 }
 0x580   :  { %2140 = vmatpush2.bf16.msra.mxu0 %v4678_v10 }
 0x581   :  { %2141 = vmatprep.subr.bf16.mxu0 %v4683_v20  ;;  %v4811_v20 = vld [vmem:[%s6314_s12 + $0x70] ss:$8 sps:$4 sm:$0xff]  }
 0x584   :  { %2142 = vmatpush2.bf16.msra.mxu0 %v4681_v0  ;;  %v4813_v0 = vld [vmem:[%s6314_s12 + $0x74] ss:$8 sps:$4 sm:$0xff]  }
 0x585   :  { %2143 = vmatprep.subr.bf16.mxu0 %v4686_v22  ;;  %v4816_v22 = vld [vmem:[%s6314_s12 + $0x64] ss:$8 sps:$4 sm:$0xff]  }
 0x588   :  { %2144 = vmatpush2.bf16.msra.mxu0 %v4684_v11  ;;  %v4814_v11 = vld [vmem:[%s6314_s12 + $0x60] ss:$8 sps:$4 sm:$0xff]  }
 0x589   :  { %2145 = vmatprep.subr.bf16.mxu0 %v4689_v23  ;;  %v4819_v23 = vld [vmem:[%s6314_s12 + $0x54] ss:$8 sps:$4 sm:$0xff]  }
 0x58c   :  { %2146 = vmatpush2.bf16.msra.mxu0 %v4687_v31  ;;  %v4817_v31 = vld [vmem:[%s6314_s12 + $0x50] ss:$8 sps:$4 sm:$0xff]  }
 0x58d   :  { %4105 = vmatprep.subr.msk.bf16.mxu0 %vm368_vm1, %v5712_v45  ;;  %v4753_v45 = vld [vmem:[%s6312_s9 + $0x1d4] ss:$8 sps:$4 sm:$0xff]  }
 0x60f   :  { %v1848_v34 = vpop.f32.mrf.mxu0 }
 0x611   :  { %v1850_v37 = vpop.f32.mrf.mxu0 }
 0x613   :  { %v1852_v7 = vpop.f32.mrf.mxu0 }
 0x614   :  { %v1857_v33 = vpack.c.bf16 %v1852_v7, %v1848_v34  ;;  %v4828_v34 = vld [vmem:[%s6314_s12 + $0x24] ss:$8 sps:$4 sm:$0xff]   ;;  %v4831_v7 = vld [vmem:[%s6314_s12 + $0x14] ss:$8 sps:$4 sm:$0xff]  }
 0x615   :  { %v1854_v13 = vpop.f32.mrf.mxu0 }
 0x616   :  { %v1858_v32 = vpack.c.bf16 %v1854_v13, %v1850_v37  ;;  %v4826_v37 = vld [vmem:[%s6314_s12 + $0x20] ss:$8 sps:$4 sm:$0xff]   ;;  %v4829_v13 = vld [vmem:[%s6314_s12 + $0x10] ss:$8 sps:$4 sm:$0xff]  }
 0x617   :  { %v1932_v61 = vpop.f32.mrf.mxu0 }
 0x618   :  { %4101 = vmatprep.mubr.msk.bf16.mxu1 %vm1193_vm5, %v1858_v32  ;;  %v4834_v32 = vld [vmem:[%s6314_s12 + $0x4] ss:$8 sps:$4 sm:$0xff]  }
 0x619   :  { %v1934_v30 = vpop.f32.mrf.mxu0  ;;  %2334 = vmatmul.mubr.bf16.vlgmr.msra.gmra.mxu1 %v1857_v33  ;;  %v4832_v33 = vld [vmem:[%s6314_s12] ss:$8 sps:$4 sm:$0xff]  }
 0x61a   :  { %2684 = vmatprep.mubr.bf16.mxu1 %v4917_v25 }
 0x61b   :  { %v1936_v35 = vpop.f32.mrf.mxu0 }
 0x61c   :  { %v1941_v36 = vpack.c.bf16 %v1936_v35, %v1932_v61  ;;  %v4837_v61 = vld [vmem:[%s6314_s12 + $0xb4] ss:$8 sps:$4 sm:$0xff]   ;;  %v4840_v35 = vld [vmem:[%s6314_s12 + $0xa4] ss:$8 sps:$4 sm:$0xff]  }
 0x61d   :  { %v1938_v16 = vpop.f32.mrf.mxu0 }
 0x61e   :  { %v1942_v17 = vpack.c.bf16 %v1938_v16, %v1934_v30  ;;  %v4835_v30 = vld [vmem:[%s6314_s12 + $0xb0] ss:$8 sps:$4 sm:$0xff]   ;;  %v4838_v16 = vld [vmem:[%s6314_s12 + $0xa0] ss:$8 sps:$4 sm:$0xff]  }
 0x620   :  { %4072 = vmatprep.mubr.msk.bf16.mxu0 %vm1193_vm5, %v1942_v17  ;;  %v4843_v17 = vld [vmem:[%s6314_s12 + $0x94] ss:$8 sps:$4 sm:$0xff]  }
 0x621   :  { %2148 = vmatmul.mubr.bf16.vlgmr.msra.gmra.mxu0 %v1941_v36  ;;  %v4841_v36 = vld [vmem:[%s6314_s12 + $0x90] ss:$8 sps:$4 sm:$0xff]  }
 0x622   :  { %2368 = vmatpush1.bf16.msra.mxu0 %v5717_v19  ;;  %2387 = vmatprep.mubr.bf16.mxu0 %v4917_v25  ;;  %v4751_v19 = vld [vmem:[%s6312_s9 + $0x1d0] ss:$8 sps:$4 sm:$0xff]  }
 0x623   :  { %2369 = vmatprep.subr.bf16.mxu0 %v5710_v38  ;;  %v4736_v38 = vld [vmem:[%s6312_s9 + $0x220] ss:$8 sps:$4 sm:$0xff]  }
 0x626   :  { %2370 = vmatpush1.bf16.msra.mxu0 %v5707_v26  ;;  %v4741_v26 = vld [vmem:[%s6312_s9 + $0x214] ss:$8 sps:$4 sm:$0xff]  }
 0x627   :  { %2572 = vmatprep.subr.bf16.mxu0 %v4735_v63 }
 0x629   :  { %4106 = vmatmul.mubr.msk.bf16.vlgmr.msra.gmra.mxu0 %vm355_vm2, %v4732_v18 }
 0x62a   :  { %2573 = vmatpush1.bf16.msra.mxu0 %v4733_v43  ;;  %v2619_v43 = vld [vmem:[%s6315_s10] sm:$0x3] }
 0x62b   :  { %2574 = vmatprep.subr.bf16.mxu0 %v4738_v6 }
 0x62e   :  { %2575 = vmatpush1.bf16.msra.mxu0 %v4736_v38 }
 0x62f   :  { %2576 = vmatprep.subr.bf16.mxu0 %v4741_v26 }
 0x632   :  { %2577 = vmatpush1.bf16.msra.mxu0 %v4739_v39 }
 0x633   :  { %2578 = vmatprep.subr.bf16.mxu0 %v4744_v40 }
 0x636   :  { %2579 = vmatpush1.bf16.msra.mxu0 %v4742_v28  ;;  %v2624_v28 = vrot.slane %v2619_v43, %v5246_v60 }
 0x637   :  { %2580 = vmatprep.subr.bf16.mxu0 %v4747_v41 }
 0x63a   :  { %2581 = vmatpush1.bf16.msra.mxu0 %v4745_v9 }
 0x63b   :  { %2582 = vmatprep.subr.bf16.mxu0 %v4750_v42 }
 0x63e   :  { %2583 = vmatpush1.bf16.msra.mxu0 %v4748_v44  ;;  %v2628_v44 = vrot.slane %v2619_v43, %v5254_v1 }
 0x63f   :  { %2584 = vmatprep.subr.bf16.mxu0 %v4753_v45 }
 0x642   :  { %2585 = vmatpush1.bf16.msra.mxu0 %v4751_v19 }
 0x643   :  { %2586 = vmatprep.subr.bf16.mxu0 %v4756_v12 }
 0x646   :  { %2587 = vmatpush1.bf16.msra.mxu0 %v4754_v46 }
 0x647   :  { %2592 = vmatprep.subr.bf16.mxu0 %v4759_v47 }
 0x64a   :  { %2593 = vmatpush2.bf16.msra.mxu0 %v4757_v48 }
 0x64b   :  { %2594 = vmatprep.subr.bf16.mxu0 %v4762_v15 }
 0x64e   :  { %2595 = vmatpush2.bf16.msra.mxu0 %v4760_v49 }
 0x64f   :  { %2596 = vmatprep.subr.bf16.mxu0 %v4765_v50 }
 0x652   :  { %2597 = vmatpush2.bf16.msra.mxu0 %v4763_v51 }
 0x653   :  { %2598 = vmatprep.subr.bf16.mxu0 %v4768_v52 }
 0x656   :  { %2599 = vmatpush2.bf16.msra.mxu0 %v4766_v53 }
 0x657   :  { %2600 = vmatprep.subr.bf16.mxu0 %v4771_v54 }
 0x65a   :  { %2601 = vmatpush2.bf16.msra.mxu0 %v4769_v55 }
 0x65b   :  { %2602 = vmatprep.subr.bf16.mxu0 %v4774_v56 }
 0x65e   :  { %2603 = vmatpush2.bf16.msra.mxu0 %v4772_v57 }
 0x65f   :  { %3080 = vmatprep.subr.bf16.mxu0 %v4813_v0  ;;  %v4789_v0 = vld [vmem:[%s6314_s12 + $0xf4] ss:$8 sps:$4 sm:$0xff]  }
 0x6d9   :  { %v2335_v63 = vpop.f32.mrf.mxu1 }
 0x6db   :  { %v2337_v18 = vpop.f32.mrf.mxu1 }
 0x6dd   :  { %v2339_v38 = vpop.f32.mrf.mxu1 }
 0x6df   :  { %v2341_v45 = vpop.f32.mrf.mxu1 }
 0x6e1   :  { %v2149_v58 = vpop.f32.mrf.mxu0 }
 0x6e2   :  { %v2336_v6 = vadd.f32 %v2335_v63, %v2149_v58 }
 0x6e3   :  { %v5929_v59 = vpop.f32.mrf.mxu0 }
 0x6e4   :  { %v2338_v39 = vadd.f32 %v2337_v18, %v5929_v59  ;;  %v2641_v59 = vld [vmem:[%s6316_s11] sm:$0x3] }
 0x6e5   :  { %v5931_v21 = vpop.f32.mrf.mxu0 }
 0x6e6   :  { %v2340_v9 = vadd.f32 %v2339_v38, %v5931_v21  ;;  %v4777_v21 = vld [vmem:[%s6314_s12 + $0x134] ss:$8 sps:$4 sm:$0xff]  }
 0x6e7   :  { %v5933_v62 = vpop.f32.mrf.mxu0 }
 0x6e8   :  { %v2342_v12 = vadd.f32 %v2341_v45, %v5933_v62  ;;  %v4775_v62 = vld [vmem:[%s6314_s12 + $0x130] ss:$8 sps:$4 sm:$0xff]   ;;  %v4855_v45 = vld [vmem:[%s6314_s12 + $0x1d4] ss:$8 sps:$4 sm:$0xff]  }
 0x6e9   :  { %v2389_v2 = vpop.f32.mrf.mxu0 }
 0x6eb   :  { %v2391_v4 = vpop.f32.mrf.mxu0 }
 0x6ed   :  { %v2393_v5 = vpop.f32.mrf.mxu0 }
 0x6ee   :  { %v2398_v10 = vpack.c.bf16 %v2393_v5, %v2389_v2  ;;  %v4166_v2 = vld [vmem:[%s6316_s11 + $0x2] sm:$0x3] }
 0x6ef   :  { %v2395_v24 = vpop.f32.mrf.mxu0  ;;  %v4778_v5 = vld [vmem:[%s6314_s12 + $0x120] ss:$8 sps:$4 sm:$0xff]  }
 0x6f0   :  { %v2399_v8 = vpack.c.bf16 %v2395_v24, %v2391_v4  ;;  %v4780_v4 = vld [vmem:[%s6314_s12 + $0x124] ss:$8 sps:$4 sm:$0xff]   ;;  %v4783_v24 = vld [vmem:[%s6314_s12 + $0x114] ss:$8 sps:$4 sm:$0xff]  }
 0x6f2   :  { %4163 = vmatprep.mubr.msk.bf16.mxu0 %vm1193_vm5, %v2399_v8  ;;  %v4781_v8 = vld [vmem:[%s6314_s12 + $0x110] ss:$8 sps:$4 sm:$0xff]  }
 0x6f3   :  { %2605 = vmatmul.mubr.bf16.vlgmr.msra.gmra.mxu0 %v2398_v10  ;;  %v4786_v10 = vld [vmem:[%s6314_s12 + $0x104] ss:$8 sps:$4 sm:$0xff]  }
 0x6f4   :  { %3081 = vmatpush1.bf16.msra.mxu0 %v4811_v20  ;;  %v4784_v20 = vld [vmem:[%s6314_s12 + $0x100] ss:$8 sps:$4 sm:$0xff]  }
 0x6f5   :  { %3082 = vmatprep.subr.bf16.mxu0 %v4816_v22  ;;  %v4787_v22 = vld [vmem:[%s6314_s12 + $0xf0] ss:$8 sps:$4 sm:$0xff]  }
 0x6f8   :  { %3083 = vmatpush1.bf16.msra.mxu0 %v4814_v11  ;;  %v4792_v11 = vld [vmem:[%s6314_s12 + $0xe4] ss:$8 sps:$4 sm:$0xff]  }
 0x6f9   :  { %3084 = vmatprep.subr.bf16.mxu0 %v4819_v23  ;;  %v4790_v23 = vld [vmem:[%s6314_s12 + $0xe0] ss:$8 sps:$4 sm:$0xff]  }
 0x6fc   :  { %3085 = vmatpush1.bf16.msra.mxu0 %v4817_v31  ;;  %v4795_v31 = vld [vmem:[%s6314_s12 + $0xd4] ss:$8 sps:$4 sm:$0xff]  }
 0x6fd   :  { %3086 = vmatprep.subr.bf16.mxu0 %v4822_v27  ;;  %v4793_v27 = vld [vmem:[%s6314_s12 + $0xd0] ss:$8 sps:$4 sm:$0xff]  }
 0x700   :  { %3087 = vmatpush1.bf16.msra.mxu0 %v4820_v29  ;;  %v4798_v29 = vld [vmem:[%s6314_s12 + $0xc4] ss:$8 sps:$4 sm:$0xff]  }
 0x701   :  { %3088 = vmatprep.subr.bf16.mxu0 %v4825_v3  ;;  %v4796_v3 = vld [vmem:[%s6314_s12 + $0xc0] ss:$8 sps:$4 sm:$0xff]  }
 0x704   :  { %3089 = vmatpush1.bf16.msra.mxu0 %v4823_v14  ;;  %v4801_v14 = vld [vmem:[%s6314_s12 + $0x174] ss:$8 sps:$4 sm:$0xff]  }
 0x705   :  { %3090 = vmatprep.subr.bf16.mxu0 %v4828_v34  ;;  %v4799_v34 = vld [vmem:[%s6314_s12 + $0x170] ss:$8 sps:$4 sm:$0xff]  }
 0x708   :  { %3091 = vmatpush1.bf16.msra.mxu0 %v4826_v37  ;;  %v4804_v37 = vld [vmem:[%s6314_s12 + $0x164] ss:$8 sps:$4 sm:$0xff]  }
 0x709   :  { %3092 = vmatprep.subr.bf16.mxu0 %v4831_v7  ;;  %v4802_v7 = vld [vmem:[%s6314_s12 + $0x160] ss:$8 sps:$4 sm:$0xff]  }
 0x70c   :  { %3093 = vmatpush1.bf16.msra.mxu0 %v4829_v13  ;;  %v4807_v13 = vld [vmem:[%s6314_s12 + $0x154] ss:$8 sps:$4 sm:$0xff]  }
 0x70d   :  { %3094 = vmatprep.subr.bf16.mxu0 %v4834_v32  ;;  %v4805_v32 = vld [vmem:[%s6314_s12 + $0x150] ss:$8 sps:$4 sm:$0xff]  }
 0x710   :  { %3095 = vmatpush1.bf16.msra.mxu0 %v4832_v33  ;;  %v4810_v33 = vld [vmem:[%s6314_s12 + $0x144] ss:$8 sps:$4 sm:$0xff]  }
 0x711   :  { %3104 = vmatprep.subr.bf16.mxu0 %v4837_v61  ;;  %v4808_v61 = vld [vmem:[%s6314_s12 + $0x140] ss:$8 sps:$4 sm:$0xff]  }
 0x714   :  { %3105 = vmatpush2.bf16.msra.mxu0 %v4835_v30  ;;  %v4846_v30 = vld [vmem:[%s6314_s12 + $0x84] ss:$8 sps:$4 sm:$0xff]  }
 0x715   :  { %3106 = vmatprep.subr.bf16.mxu0 %v4840_v35  ;;  %v4844_v35 = vld [vmem:[%s6314_s12 + $0x80] ss:$8 sps:$4 sm:$0xff]  }
 0x718   :  { %3107 = vmatpush2.bf16.msra.mxu0 %v4838_v16 }
 0x719   :  { %3108 = vmatprep.subr.bf16.mxu0 %v4843_v17 }
 0x71c   :  { %3109 = vmatpush2.bf16.msra.mxu0 %v4841_v36 }
 0x71d   :  { %3110 = vmatprep.subr.bf16.mxu0 %v4846_v30 }
 0x720   :  { %3111 = vmatpush2.bf16.msra.mxu0 %v4844_v35  ;;  %v4886_v35 = vld [vmem:[%s6318_s16 + $0x38] sm:$0xff]  }
 0x7b3   :  { %v2606_v26 = vpop.f32.mrf.mxu0 }
 0x7b4   :  { %v2615_v40 = vadd.f32 %v2606_v26, %v2336_v6 }
 0x7b5   :  { %v2608_v41 = vpop.f32.mrf.mxu0 }
 0x7b6   :  { %v2616_v42 = vadd.f32 %v2608_v41, %v2338_v39  ;;  %v2631_v46 = vadd.f32 %v2624_v28, %v2615_v40 }
 0x7b7   :  { %v2610_v19 = vpop.f32.mrf.mxu0 }
 0x7b8   :  { %v2617_v47 = vadd.f32 %v2610_v19, %v2340_v9  ;;  %v2632_v15 = vadd.f32 %v2628_v44, %v2616_v42  ;;  %v2635_v51 = vmax.f32 %v2631_v46, 0.0  ;;  %v4243_v9 = vld [vmem:[%s6316_s11 + $0x4] sm:$0x3]  ;;  %v4847_v42 = vld [vmem:[%s6314_s12 + $0x1f0] ss:$8 sps:$4 sm:$0xff]  }
 0x7b9   :  { %v2612_v48 = vpop.f32.mrf.mxu0  ;;  %v4853_v19 = vld [vmem:[%s6314_s12 + $0x1d0] ss:$8 sps:$4 sm:$0xff]   ;;  %v4856_v46 = vld [vmem:[%s6314_s12 + $0x1c0] ss:$8 sps:$4 sm:$0xff]  }
 0x7ba   :  { %v2633_v49 = vadd.f32 %v2624_v28, %v2617_v47  ;;  %v2618_v50 = vadd.f32 %v2612_v48, %v2342_v12  ;;  %v2636_v54 = vmax.f32 %v2632_v15, 0.0  ;;  %v4849_v28 = vld [vmem:[%s6314_s12 + $0x1f4] ss:$8 sps:$4 sm:$0xff]   ;;  %v4858_v12 = vld [vmem:[%s6314_s12 + $0x1c4] ss:$8 sps:$4 sm:$0xff]  }
 0x7bb   :  { %v4861_v47 = vld [vmem:[%s6314_s12 + $0x1b4] ss:$8 sps:$4 sm:$0xff]   ;;  %v4859_v48 = vld [vmem:[%s6314_s12 + $0x1b0] ss:$8 sps:$4 sm:$0xff]   ;;  %v4864_v15 = vld [vmem:[%s6314_s12 + $0x1a4] ss:$8 sps:$4 sm:$0xff]  }
 0x7bc   :  { %v2637_v52 = vmax.f32 %v2633_v49, 0.0  ;;  %v2634_v53 = vadd.f32 %v2628_v44, %v2618_v50  ;;  %v4852_v44 = vld [vmem:[%s6314_s12 + $0x1e4] ss:$8 sps:$4 sm:$0xff]   ;;  %v4862_v49 = vld [vmem:[%s6314_s12 + $0x1a0] ss:$8 sps:$4 sm:$0xff]  }
 0x7bd   :  { %v4867_v50 = vld [vmem:[%s6314_s12 + $0x194] ss:$8 sps:$4 sm:$0xff]  }
 0x7be   :  { %v2639_v55 = vpack.c.bf16 %v2637_v52, %v2635_v51  ;;  %v2638_v56 = vmax.f32 %v2634_v53, 0.0  ;;  %v4865_v51 = vld [vmem:[%s6314_s12 + $0x190] ss:$8 sps:$4 sm:$0xff]   ;;  %v4870_v52 = vld [vmem:[%s6314_s12 + $0x184] ss:$8 sps:$4 sm:$0xff]  }
 0x7bf   :  { %v4868_v53 = vld [vmem:[%s6314_s12 + $0x180] ss:$8 sps:$4 sm:$0xff]  }
 0x7c0   :  { %v2640_v57 = vpack.c.bf16 %v2638_v56, %v2636_v54  ;;  %v6012_v58 = vsel %vm368_vm1, %v2639_v55, 0  ;;  %v4873_v54 = vld [vmem:[%s6314_s12 + $0x234] ss:$8 sps:$4 sm:$0xff]   ;;  %v4871_v55 = vld [vmem:[%s6314_s12 + $0x230] ss:$8 sps:$4 sm:$0xff]  }
 0x7c1   :  { %v4876_v56 = vld [vmem:[%s6314_s12 + $0x224] ss:$8 sps:$4 sm:$0xff]  }
 0x7c2   :  { %4164 = vmatprep.subr.msk.bf16.mxu1 %vm368_vm1, %v2640_v57 }
 0x7c3   :  { %2667 = vmatpush1.bf16.msra.mxu1 %v6012_v58 }
 0x7c4   :  { %4167 = vmatprep.subr.msk.bf16.mxu1 %vm368_vm1, %v2640_v57 }
 0x7c6   :  { %4165 = vmatmul.mubr.msk.bf16.vlgmr.msra.gmra.mxu1 %vm2642_vm6, %v2641_v59  ;;  %v4877_v59 = vld [vmem:[%s6314_s12 + $0x210] ss:$8 sps:$4 sm:$0xff]  }
 0x7c7   :  { %2739 = vmatpush1.bf16.msra.mxu1 %v6012_v58  ;;  %2756 = vmatprep.mubr.bf16.mxu1 %v4917_v25 }
 0x7c8   :  { %2916 = vmatprep.subr.bf16.mxu1 %v4777_v21  ;;  %v4882_v21 = vld [vmem:[%s6314_s12 + $0x204] ss:$8 sps:$4 sm:$0xff]  }
 0x7ce   :  { %4168 = vmatmul.mubr.msk.bf16.vlgmr.msra.gmra.mxu1 %vm2642_vm6, %v4166_v2  ;;  %v4883_v2 = vld [vmem:[%s6317_s14 + $0x78] sm:$0xff]  }
 0x7cf   :  { %2917 = vmatpush1.bf16.msra.mxu1 %v4775_v62  ;;  %v4880_v62 = vld [vmem:[%s6314_s12 + $0x200] ss:$8 sps:$4 sm:$0xff]   ;;  %4363 = vmatprep.subr.bf16.mxu0 %v4883_v2 }
 0x7d0   :  { %2918 = vmatprep.subr.bf16.mxu1 %v4780_v4  ;;  %v4884_v4 = vld [vmem:[%s6318_s16 + $0x78] sm:$0xff]  }
 0x7d3   :  { %2919 = vmatpush1.bf16.msra.mxu1 %v4778_v5  ;;  %v4885_v5 = vld [vmem:[%s6317_s14 + $0x38] sm:$0xff]  }
 0x7d4   :  { %2920 = vmatprep.subr.bf16.mxu1 %v4783_v24  ;;  %v4887_v24 = vld [vmem:[%s6317_s14 + $0x70] sm:$0xff]  }
 0x7d7   :  { %2921 = vmatpush1.bf16.msra.mxu1 %v4781_v8  ;;  %v4889_v8 = vld [vmem:[%s6317_s14 + $0x30] sm:$0xff]  }
 0x7d8   :  { %2922 = vmatprep.subr.bf16.mxu1 %v4786_v10  ;;  %v4891_v10 = vld [vmem:[%s6317_s14 + $0x68] sm:$0xff]  }
 0x7db   :  { %2923 = vmatpush1.bf16.msra.mxu1 %v4784_v20  ;;  %v4893_v20 = vld [vmem:[%s6317_s14 + $0x28] sm:$0xff]  }
 0x7dc   :  { %2924 = vmatprep.subr.bf16.mxu1 %v4789_v0  ;;  %v4895_v0 = vld [vmem:[%s6317_s14 + $0x60] sm:$0xff]  }
 0x7df   :  { %2925 = vmatpush1.bf16.msra.mxu1 %v4787_v22  ;;  %v4897_v22 = vld [vmem:[%s6317_s14 + $0x20] sm:$0xff]  }
 0x7e0   :  { %2926 = vmatprep.subr.bf16.mxu1 %v4792_v11  ;;  %v4899_v11 = vld [vmem:[%s6317_s14 + $0x58] sm:$0xff]  }
 0x7e3   :  { %2927 = vmatpush1.bf16.msra.mxu1 %v4790_v23  ;;  %v4901_v23 = vld [vmem:[%s6317_s14 + $0x18] sm:$0xff]  }
 0x7e4   :  { %2928 = vmatprep.subr.bf16.mxu1 %v4795_v31 }
 0x7e7   :  { %2929 = vmatpush1.bf16.msra.mxu1 %v4793_v27 }
 0x7e8   :  { %2930 = vmatprep.subr.bf16.mxu1 %v4798_v29 }
 0x7eb   :  { %2931 = vmatpush1.bf16.msra.mxu1 %v4796_v3 }
 0x7ec   :  { %2940 = vmatprep.subr.bf16.mxu1 %v4801_v14 }
 0x7ef   :  { %2941 = vmatpush2.bf16.msra.mxu1 %v4799_v34 }
 0x7f0   :  { %2942 = vmatprep.subr.bf16.mxu1 %v4804_v37 }
 0x7f3   :  { %2943 = vmatpush2.bf16.msra.mxu1 %v4802_v7 }
 0x7f4   :  { %2944 = vmatprep.subr.bf16.mxu1 %v4807_v13 }
 0x7f7   :  { %2945 = vmatpush2.bf16.msra.mxu1 %v4805_v32 }
 0x7f8   :  { %2946 = vmatprep.subr.bf16.mxu1 %v4810_v33 }
 0x7fb   :  { %2947 = vmatpush2.bf16.msra.mxu1 %v4808_v61 }
 0x7fc   :  { %4244 = vmatprep.subr.msk.bf16.mxu1 %vm368_vm1, %v2640_v57  ;;  %v4874_v57 = vld [vmem:[%s6314_s12 + $0x220] ss:$8 sps:$4 sm:$0xff]  }
 0x886   :  { %v2686_v16 = vpop.f32.mrf.mxu1 }
 0x887   :  { %v2693_v63 = vpack.c.bf16 %v2686_v16, %v2686_v16 }
 0x888   :  { %v2688_v17 = vpop.f32.mrf.mxu1 }
 0x889   :  { %v2694_v36 = vpack.c.bf16 %v2688_v17, %v2688_v17 }
 0x88a   :  { %v2690_v18 = vpop.f32.mrf.mxu1 }
 0x88b   :  { %4242 = vmatprep.mubr.msk.bf16.mxu0 %vm2912_vm7, %v2694_v36  ;;  %v4888_v36 = vld [vmem:[%s6318_s16 + $0x70] sm:$0xff]  }
 0x88c   :  { %v2691_v43 = vpop.f32.mrf.mxu1  ;;  %3113 = vmatmul.mubr.bf16.vlgmr.msra.gmra.mxu0 %v2693_v63  ;;  %v4890_v18 = vld [vmem:[%s6318_s16 + $0x30] sm:$0xff]  }
 0x88d   :  { %4364 = vmatpush3.bf16.msra.mxu0 %v4885_v5  ;;  %v4892_v43 = vld [vmem:[%s6318_s16 + $0x68] sm:$0xff]  }
 0x88e   :  { %v2758_v6 = vpop.f32.mrf.mxu1  ;;  %4365 = vmatprep.subr.bf16.mxu0 %v4887_v24  ;;  %v4312_v24 = vld [vmem:[%s6321_s17] ss:$0 sm:$0xff] }
 0x88f   :  { %v2765_v39 = vpack.c.bf16 %v2758_v6, %v2758_v6  ;;  %v4894_v6 = vld [vmem:[%s6318_s16 + $0x28] sm:$0xff]  }
 0x890   :  { %v2760_v38 = vpop.f32.mrf.mxu1 }
 0x891   :  { %v2766_v26 = vpack.c.bf16 %v2760_v38, %v2760_v38  ;;  %4366 = vmatpush3.bf16.msra.mxu0 %v4889_v8  ;;  %v4896_v38 = vld [vmem:[%s6318_s16 + $0x60] sm:$0xff]  }
 0x892   :  { %v2762_v40 = vpop.f32.mrf.mxu1  ;;  %4367 = vmatprep.subr.bf16.mxu0 %v4891_v10 }
 0x893   :  { %4217 = vmatprep.mubr.msk.bf16.mxu1 %vm2912_vm7, %v2766_v26  ;;  %v4898_v26 = vld [vmem:[%s6318_s16 + $0x20] sm:$0xff]   ;;  %v4902_v40 = vld [vmem:[%s6318_s16 + $0x18] sm:$0xff]  }
 0x894   :  { %2949 = vmatmul.mubr.bf16.vlgmr.msra.gmra.mxu1 %v2765_v39  ;;  %v2763_v41 = vpop.f32.mrf.mxu1  ;;  %v4900_v39 = vld [vmem:[%s6318_s16 + $0x58] sm:$0xff]  }
 0x895   :  { %3141 = vmatpush1.bf16.msra.mxu1 %v6012_v58  ;;  %3158 = vmatprep.mubr.bf16.mxu1 %v4917_v25  ;;  %v4850_v25 = vld [vmem:[%s6314_s12 + $0x1e0] ss:$8 sps:$4 sm:$0xff]   ;;  %v4879_v58 = vld [vmem:[%s6314_s12 + $0x214] ss:$8 sps:$4 sm:$0xff]  }
 0x896   :  { %3317 = vmatprep.subr.bf16.mxu1 %v4849_v28  ;;  %4368 = vmatpush3.bf16.msra.mxu0 %v4893_v20  ;;  %v4903_v28 = vld [vmem:[%s6317_s14 + $0x50] sm:$0xff]  }
 0x897   :  { %4369 = vmatprep.subr.bf16.mxu0 %v4895_v0  ;;  %v4904_v41 = vld [vmem:[%s6318_s16 + $0x50] sm:$0xff]  }
 0x89a   :  { %4370 = vmatpush3.bf16.msra.mxu0 %v4897_v22 }
 0x89b   :  { %4371 = vmatprep.subr.bf16.mxu0 %v4899_v11 }
 0x89c   :  { %4245 = vmatmul.mubr.msk.bf16.vlgmr.msra.gmra.mxu1 %vm2642_vm6, %v4243_v9  ;;  %v4905_v9 = vld [vmem:[%s6317_s14 + $0x10] sm:$0xff]  }
 0x89d   :  { %3318 = vmatpush1.bf16.msra.mxu1 %v4847_v42  ;;  %v4906_v42 = vld [vmem:[%s6318_s16 + $0x10] sm:$0xff]  }
 0x89e   :  { %3319 = vmatprep.subr.bf16.mxu1 %v4852_v44  ;;  %4372 = vmatpush3.bf16.msra.mxu0 %v4901_v23  ;;  %v4907_v44 = vld [vmem:[%s6317_s14 + $0x48] sm:$0xff]  }
 0x89f   :  { %4373 = vmatprep.subr.bf16.mxu0 %v4903_v28 }
 0x8a1   :  { %3320 = vmatpush1.bf16.msra.mxu1 %v4850_v25  ;;  %v4908_v25 = vld [vmem:[%s6318_s16 + $0x48] sm:$0xff]  }
 0x8a2   :  { %3321 = vmatprep.subr.bf16.mxu1 %v4855_v45  ;;  %4374 = vmatpush3.bf16.msra.mxu0 %v4905_v9  ;;  %v4909_v45 = vld [vmem:[%s6317_s14 + $0x8] sm:$0xff]  }
 0x8a3   :  { %4375 = vmatprep.subr.bf16.mxu0 %v4907_v44 }
 0x8a5   :  { %3322 = vmatpush1.bf16.msra.mxu1 %v4853_v19  ;;  %v4910_v19 = vld [vmem:[%s6318_s16 + $0x8] sm:$0xff]  }
 0x8a6   :  { %3323 = vmatprep.subr.bf16.mxu1 %v4858_v12  ;;  %4376 = vmatpush3.bf16.msra.mxu0 %v4909_v45  ;;  %v4911_v12 = vld [vmem:[%s6317_s14 + $0x40] sm:$0xff]  }
 0x8a7   :  { %4377 = vmatprep.subr.bf16.mxu0 %v4911_v12 }
 0x8a9   :  { %3324 = vmatpush1.bf16.msra.mxu1 %v4856_v46  ;;  %v4912_v46 = vld [vmem:[%s6318_s16 + $0x40] sm:$0xff]  }
 0x8aa   :  { %3325 = vmatprep.subr.bf16.mxu1 %v4861_v47  ;;  %v4913_v47 = vld [vmem:[%s6317_s14] sm:$0xff]  }
 0x8ab   :  { %4378 = vmatpush3.bf16.msra.mxu0 %v4913_v47 }
 0x8ad   :  { %3326 = vmatpush1.bf16.msra.mxu1 %v4859_v48  ;;  %v4914_v48 = vld [vmem:[%s6318_s16] sm:$0xff]  }
 0x8ae   :  { %3327 = vmatprep.subr.bf16.mxu1 %v4864_v15  ;;  %v3360_v15 = vld [vmem:[%s6319_s13] sm:$0x3] }
 0x8b1   :  { %3328 = vmatpush1.bf16.msra.mxu1 %v4862_v49  ;;  %v3365_v49 = vrot.slane %v3360_v15, %v5246_v60 }
 0x8b2   :  { %3329 = vmatprep.subr.bf16.mxu1 %v4867_v50 }
 0x8b5   :  { %3330 = vmatpush1.bf16.msra.mxu1 %v4865_v51 }
 0x8b6   :  { %3331 = vmatprep.subr.bf16.mxu1 %v4870_v52  ;;  %v3369_v52 = vrot.slane %v3360_v15, %v5254_v1 }
 0x8b9   :  { %3332 = vmatpush1.bf16.msra.mxu1 %v4868_v53 }
 0x8ba   :  { %3341 = vmatprep.subr.bf16.mxu1 %v4873_v54 }
 0x8bd   :  { %3342 = vmatpush2.bf16.msra.mxu1 %v4871_v55 }
 0x8be   :  { %3343 = vmatprep.subr.bf16.mxu1 %v4876_v56 }
 0x8c1   :  { %3344 = vmatpush2.bf16.msra.mxu1 %v4874_v57 }
 0x8c2   :  { %3345 = vmatprep.subr.bf16.mxu1 %v4879_v58 }
 0x8c5   :  { %3346 = vmatpush2.bf16.msra.mxu1 %v4877_v59 }
 0x8c6   :  { %3347 = vmatprep.subr.bf16.mxu1 %v4882_v21 }
 0x8c9   :  { %3348 = vmatpush2.bf16.msra.mxu1 %v4880_v62 }
 0x8ca   :  { %4385 = vmatprep.subr.bf16.mxu1 %v4884_v4  ;;  %v4918_v4 = vmov 0.0  }
 0x8cb   :  { %3750 = vst [vmem:[%s6320_s18] sm:$0xf] %v4918_v4 }
 0x94c   :  { %v3114_v31 = vpop.f32.mrf.mxu0 }
 0x94e   :  { %v3116_v27 = vpop.f32.mrf.mxu0 }
 0x950   :  { %v3118_v29 = vpop.f32.mrf.mxu0 }
 0x951   :  { %v4295_v29 = vld [vmem:[%s6322_s15] ss:$0 sm:$0xff] }
 0x952   :  { %v3119_v3 = vpop.f32.mrf.mxu0 }
 0x954   :  { %v2950_v14 = vpop.f32.mrf.mxu1 }
 0x955   :  { %v3115_v34 = vadd.f32 %v3114_v31, %v2950_v14  ;;  %v3730_v14 = vld [vmem:[%s6323_s1] sm:$0xf] }
 0x956   :  { %v2952_v37 = vpop.f32.mrf.mxu1 }
 0x957   :  { %v3117_v7 = vadd.f32 %v3116_v27, %v2952_v37 }
 0x958   :  { %v2954_v13 = vpop.f32.mrf.mxu1 }
 0x95a   :  { %v2955_v32 = vpop.f32.mrf.mxu1 }
 0x95c   :  { %v3160_v33 = vpop.f32.mrf.mxu1 }
 0x95d   :  { %v3167_v16 = vpack.c.bf16 %v3160_v33, %v3160_v33 }
 0x95e   :  { %v3162_v61 = vpop.f32.mrf.mxu1 }
 0x95f   :  { %v3168_v30 = vpack.c.bf16 %v3162_v61, %v3162_v61 }
 0x960   :  { %v3164_v17 = vpop.f32.mrf.mxu1 }
 0x961   :  { %4294 = vmatprep.mubr.msk.bf16.mxu1 %vm2912_vm7, %v3168_v30 }
 0x962   :  { %3350 = vmatmul.mubr.bf16.vlgmr.msra.gmra.mxu1 %v3167_v16  ;;  %v3165_v63 = vpop.f32.mrf.mxu1 }
 0x963   :  { %4386 = vmatpush3.bf16.msra.mxu1 %v4886_v35 }
 0x964   :  { %4387 = vmatprep.subr.bf16.mxu1 %v4888_v36 }
 0x967   :  { %4388 = vmatpush3.bf16.msra.mxu1 %v4890_v18 }
 0x968   :  { %4389 = vmatprep.subr.bf16.mxu1 %v4892_v43 }
 0x96b   :  { %4390 = vmatpush3.bf16.msra.mxu1 %v4894_v6 }
 0x96c   :  { %4391 = vmatprep.subr.bf16.mxu1 %v4896_v38 }
 0x96f   :  { %4392 = vmatpush3.bf16.msra.mxu1 %v4898_v26 }
 0x970   :  { %4393 = vmatprep.subr.bf16.mxu1 %v4900_v39 }
 0x973   :  { %4394 = vmatpush3.bf16.msra.mxu1 %v4902_v40 }
 0x974   :  { %4395 = vmatprep.subr.bf16.mxu1 %v4904_v41 }
 0x977   :  { %4396 = vmatpush3.bf16.msra.mxu1 %v4906_v42 }
 0x978   :  { %4397 = vmatprep.subr.bf16.mxu1 %v4908_v25 }
 0x97b   :  { %4398 = vmatpush3.bf16.msra.mxu1 %v4910_v19 }
 0x97c   :  { %4399 = vmatprep.subr.bf16.mxu1 %v4912_v46 }
 0x97f   :  { %4400 = vmatpush3.bf16.msra.mxu1 %v4914_v48 }
 0xa22   :  { %v3351_v50 = vpop.f32.mrf.mxu1 }
 0xa23   :  { %v3358_v51 = vadd.f32 %v3351_v50, %v3115_v34 }
 0xa24   :  { %v3353_v53 = vpop.f32.mrf.mxu1 }
 0xa25   :  { %v3372_v54 = vadd.f32 %v3365_v49, %v3358_v51  ;;  %v3359_v55 = vadd.f32 %v3353_v53, %v3117_v7 }
 0xa26   :  { %v3355_v56 = vpop.f32.mrf.mxu1 }
 0xa27   :  { %v3373_v57 = vadd.f32 %v3369_v52, %v3359_v55  ;;  %v3374_v58 = vmax.f32 %v3372_v54, 0.0 }
 0xa28   :  { %v3356_v59 = vpop.f32.mrf.mxu1 }
 0xa29   :  { %v3375_v21 = vmax.f32 %v3373_v57, 0.0  ;;  %v3376_v2 = vpack.c.bf16 %v3374_v58, %v3374_v58 }
 0xa2b   :  { %v3377_v62 = vpack.c.bf16 %v3375_v21, %v3375_v21 }
 0xa2d   :  { %3545 = vmatprep.mubr.bf16.mxu0 %v3377_v62  ;;  %3720 = vmatprep.mubr.bf16.mxu1 %v3377_v62 }
 0xa2e   :  { %3546 = vmatmul.mubr.bf16.vlgmr.msra.gmra.mxu0 %v3376_v2  ;;  %3721 = vmatmul.mubr.bf16.vlgmr.msra.gmra.mxu1 %v3376_v2 }
 0xaee   :  { %v4379_v60 = vpop.f32.mrf.mxu0  ;;  %v4401_v1 = vpop.f32.mrf.mxu1 }
 0xaf0   :  { %v4380_v5 = vpop.f32.mrf.mxu0  ;;  %v4402_v8 = vpop.f32.mrf.mxu1 }
 0xaf1   :  { %v4403_v10 = vadd.f32 %v4402_v8, %v4401_v1  ;;  %v4381_v27 = vadd.f32 %v4380_v5, %v4379_v60 }
 0xaf2   :  { %v4382_v20 = vpop.f32.mrf.mxu0  ;;  %v4404_v0 = vpop.f32.mrf.mxu1 }
 0xaf3   :  { %v3723_v22 = vadd.f32 %v4403_v10, %v4312_v24  ;;  %v3548_v3 = vadd.f32 %v4381_v27, %v4295_v29 }
 0xaf4   :  { %v4383_v11 = vpop.f32.mrf.mxu0  ;;  %v4405_v23 = vpop.f32.mrf.mxu1 }
 0xaf5   :  { %v3728_v31 = vmul.f32 1.442695, %v3723_v22  ;;  %v3734_v37 = vmul.f32 %v3548_v3, %v3548_v3 }
 0xaf7   :  { %4915 = vpow2.f32 %v3728_v31 }
 0xb04   :  { %v4916_v34 = vpop.eup %4915 }
 0xb05   :  { %v3731_v7 = vmul.f32 %v4916_v34, %v3730_v14  ;;  %v3733_v13 = vmul.f32 %v4916_v34, %v4916_v34 }
 0xb07   :  { %v3732_v32 = vadd.f32 %v3731_v7, %v3548_v3  ;;  %v3735_v33 = vadd.f32 %v3734_v37, %v3733_v13 }
 0xb09   :  { %v3736_v61 = vsub.f32 %v3735_v33, %v3723_v22  ;;  %3751 = vst.msk [vmem:[%s6320_s18] sm:$0xf] %vm3739_vm8, %v3732_v32 }
 0xb0b   :  { %v4329_v30 = vadd.f32 -1.0, %v3736_v61 }
 0xb0d   :  { %v3738_v35 = vmul.f32 0.5, %v4329_v30 }
 0xb0f   :  { %v3740_v16 = vsel %vm3739_vm8, %v3738_v35, 0.0 }
 0xb10   :  { %3741 = vadd.xlane.f32.xlu0 %v3740_v16 }
 0xb99   :  { %v3742_v17 = vpop.xlane.xlu0 %3741 }
 0xb9a   :  { %v3743_v36 = vrot.slane %v3742_v17, 4 }
 0xb9c   :  { %v3744_v63 = vadd.f32 %v3743_v36, %v3742_v17 }
 0xb9e   :  { %v3745_v18 = vrot.slane %v3744_v63, 2 }
 0xba0   :  { %v3746_v43 = vadd.f32 %v3745_v18, %v3744_v63 }
 0xba2   :  { %v3747_v6 = vrot.slane %v3746_v43, 1 }
 0xba4   :  { %v3748_v38 = vadd.f32 %v3747_v6, %v3746_v43 }
 0xba6   :  { %4473 = vpush %v3748_v38 }
 0xbd7   :  { %s4474_s1 = spop %4473 }
 0xbd8   :  { %v3752_v26 = vstv %s4474_s1 }
 0xbd9   :  { %3754 = vst.msk [vmem:[%s6320_s18] sm:$0xf] %vm3753_vm9, %v3752_v26 }

</bundles_post_ra>
